<compile_context>
chip_gen: v7x
topology: tpu7x:2x2x1
jax: 0.10.0
libtpu: 0.0.40
codegen_flags: <defaults>
</compile_context>

<pallas_src>
import functools
import numpy as np
import jax
import jax.numpy as jnp
from jax.experimental import pallas as pl
from jax.experimental.pallas import tpu as pltpu

EPS = 1e-5  # nn.LayerNorm default eps


# ------------------------------ kernel bodies ------------------------------ #
def _layer_norm(x, gamma, beta):
    mu = jnp.mean(x, axis=-1, keepdims=True)
    var = jnp.mean((x - mu) ** 2, axis=-1, keepdims=True)
    return (x - mu) * jax.lax.rsqrt(var + EPS) * gamma + beta


def _ln_qkv_kernel(x_ref, g1_ref, b1_ref, qkvw_ref, qkv_ref):
    # LayerNorm1 (f32) + fused [q | k | v] projection (bf16 MXU, f32 acc).
    # The attention scale is already folded into the q columns of qkvw.
    xn = _layer_norm(x_ref[...], g1_ref[0], b1_ref[0])
    qkv = jnp.dot(xn.astype(jnp.bfloat16), qkvw_ref[...],
                  preferred_element_type=jnp.float32)
    qkv_ref[...] = qkv.astype(jnp.bfloat16)            # lane-dense (TM, 3C) store


def _flash_sdpa_kernel(q_ref, k_ref, v_ref, o_ref, m_sc, l_sc, acc_sc):
    # Online-softmax attention for one (batch, head, q-tile); grid axis 3 = KV.
    ki = pl.program_id(3)

    @pl.when(ki == 0)
    def _():
        m_sc[...] = jnp.full(m_sc.shape, -jnp.inf, m_sc.dtype)
        l_sc[...] = jnp.zeros(l_sc.shape, l_sc.dtype)
        acc_sc[...] = jnp.zeros(acc_sc.shape, acc_sc.dtype)

    # scores (scale pre-folded into q weights): (TQ, TK) f32 via MXU trans_b
    s = jax.lax.dot_general(q_ref[...], k_ref[...],
                            dimension_numbers=(((1,), (1,)), ((), ())),
                            preferred_element_type=jnp.float32)
    m_new = jnp.maximum(m_sc[...], jnp.max(s, axis=-1, keepdims=True))
    alpha = jnp.exp(m_sc[...] - m_new)
    p = jnp.exp(s - m_new)                              # f32 softmax stats
    l_sc[...] = alpha * l_sc[...] + jnp.sum(p, axis=-1, keepdims=True)
    acc_sc[...] = alpha * acc_sc[...] + jnp.dot(
        p.astype(jnp.bfloat16), v_ref[...], preferred_element_type=jnp.float32)
    m_sc[...] = m_new

    @pl.when(ki == pl.num_programs(3) - 1)
    def _():
        inv = pl.reciprocal(l_sc[...], approx=True)     # EUP slot
        o_ref[...] = (acc_sc[...] * inv).astype(o_ref.dtype)   # lane-dense (TQ, hd)


def _proj_mlp_kernel(n_chunks, a_ref, x_ref, pw_ref, pb_ref, g2_ref, b2_ref,
                     w1_ref, fb1_ref, w2_ref, fb2_ref, o_ref):
    # attention output projection + residual 1
    proj = jnp.dot(a_ref[...], pw_ref[...],
                   preferred_element_type=jnp.float32) + pb_ref[0]
    x1 = x_ref[...] + proj                              # f32 residual
    # LayerNorm2, then MLP with the hidden dim chunked (small live activation)
    xn = _layer_norm(x1, g2_ref[0], b2_ref[0]).astype(jnp.bfloat16)

    def chunk_body(c, y):
        h = jnp.dot(xn, w1_ref[c], preferred_element_type=jnp.float32) + fb1_ref[c]
        h = jax.nn.gelu(h, approximate=False)           # exact erf GELU (nn.GELU())
        return y + jnp.dot(h.astype(jnp.bfloat16), w2_ref[c],
                           preferred_element_type=jnp.float32)

    y = jax.lax.fori_loop(0, n_chunks, chunk_body, jnp.zeros_like(x1), unroll=True)
    o_ref[...] = x1 + y + fb2_ref[0]                    # lane-dense (TM, C) store


# ------------------------------ weight prepare ------------------------------ #
def prepare_block_params(params, num_heads, *, hidden_chunk=256):
    """One-time weight transforms (bf16 cast, q/kv fuse, scale fold, MLP chunk
    layout). Do this OUTSIDE the per-call path so no HBM passes repeat."""
    C = params["q_w"].shape[0]
    hidden = params["fc1_w"].shape[1]
    head_dim = C // num_heads
    scale = head_dim ** (-0.5)

    hc = min(hidden_chunk, hidden)
    if hidden % hc != 0:
        hc = hidden                                     # fallback: single chunk
    nhc = hidden // hc

    # qkv_bias=False (Block default): fuse q and kv projections; fold the
    # attention scale into the q columns (removes the score multiply in K2).
    qkv_w = jnp.concatenate([params["q_w"] * scale, params["kv_w"]],
                            axis=1).astype(jnp.bfloat16)                 # (C, 3C)
    # MLP weights laid out with a leading chunk axis for in-kernel ref[c] loads.
    w1 = params["fc1_w"].reshape(C, nhc, hc).transpose(1, 0, 2).astype(jnp.bfloat16)
    fb1 = params["fc1_b"].reshape(nhc, 1, hc)
    w2 = params["fc2_w"].reshape(nhc, hc, C).astype(jnp.bfloat16)

    return dict(
        qkv_w=qkv_w,
        g1=params["g1"].reshape(1, C), b1=params["b1"].reshape(1, C),
        proj_w=params["proj_w"].astype(jnp.bfloat16),
        proj_b=params["proj_b"].reshape(1, C),
        g2=params["g2"].reshape(1, C), b2=params["b2"].reshape(1, C),
        w1=w1, fb1=fb1, w2=w2, fb2=params["fc2_b"].reshape(1, C),
        num_heads=num_heads, head_dim=head_dim, hidden=hidden,
        hidden_chunk=hc, n_hidden_chunks=nhc,
    )


# ------------------------------ block wrapper ------------------------------ #
def block_forward(x, prep, H, W, *, token_tile=256, q_tile=256, kv_tile=256):
    # token_tile: 256 is safe on v5e/v7x; raise to 512 on v6e (32 MiB scoped VMEM).
    B, L, C = x.shape
    assert L == H * W
    num_heads = prep["num_heads"]
    head_dim = prep["head_dim"]
    hc, nhc = prep["hidden_chunk"], prep["n_hidden_chunks"]
    T = B * L

    # TODO(synk): sr_ratio > 1 branch (strided Conv2d KV reduction + its own
    # LayerNorm) is not implemented; the Block default sr_ratio == 1 path is.
    # Dropout / DropPath are identity (p = 0.0), matching the module defaults.
    # TODO(synk): head_dim < 128 needs head-grouped column blocks in K2
    # (group heads so the column block width is a multiple of 128).
    assert head_dim % 128 == 0, "transpose-free K2 path needs lane-aligned heads"

    TM = min(token_tile, T)
    TQ = min(q_tile, L)
    TK = min(kv_tile, L)
    if L % TQ != 0:
        TQ = L
    if L % TK != 0:
        TK = L
    nq, nk = L // TQ, L // TK
    nh = num_heads

    tokens = x.reshape(T, C)

    # ---- K1: LayerNorm1 + fused qkv projection (token tiles) -------------- #
    qkv = pl.pallas_call(
        _ln_qkv_kernel,
        out_shape=jax.ShapeDtypeStruct((T, 3 * C), jnp.bfloat16),
        grid=(pl.cdiv(T, TM),),
        in_specs=[
            pl.BlockSpec((TM, C), lambda i: (i, 0)),       # tokens (f32)
            pl.BlockSpec((1, C), lambda i: (0, 0)),        # norm1 gamma
            pl.BlockSpec((1, C), lambda i: (0, 0)),        # norm1 beta
            pl.BlockSpec((C, 3 * C), lambda i: (0, 0)),    # fused qkv weight (bf16)
        ],
        out_specs=pl.BlockSpec((TM, 3 * C), lambda i: (i, 0)),
        compiler_params=pltpu.CompilerParams(dimension_semantics=("parallel",)),
    )(tokens, prep["g1"], prep["b1"], prep["qkv_w"])

    # ---- K2: flash attention, q/k/v read straight out of the (T,3C) buffer -- #
    # Column blocks (width head_dim): q head h -> h, k -> nh+h, v -> 2*nh+h.
    # Row blocks: batch b spans row-blocks [b*nq, (b+1)*nq) (q) / [b*nk, ...) (kv).
    attn = pl.pallas_call(
        _flash_sdpa_kernel,
        out_shape=jax.ShapeDtypeStruct((T, C), jnp.bfloat16),
        grid=(B, nh, nq, nk),
        in_specs=[
            pl.BlockSpec((TQ, head_dim), lambda b, h, qi, ki: (b * nq + qi, h)),
            pl.BlockSpec((TK, head_dim), lambda b, h, qi, ki: (b * nk + ki, nh + h)),
            pl.BlockSpec((TK, head_dim), lambda b, h, qi, ki: (b * nk + ki, 2 * nh + h)),
        ],
        out_specs=pl.BlockSpec((TQ, head_dim), lambda b, h, qi, ki: (b * nq + qi, h)),
        scratch_shapes=[
            pltpu.VMEM((TQ, 1), jnp.float32),              # running max
            pltpu.VMEM((TQ, 1), jnp.float32),              # running sum
            pltpu.VMEM((TQ, head_dim), jnp.float32),       # running accumulator
        ],
        compiler_params=pltpu.CompilerParams(
            dimension_semantics=("parallel", "parallel", "parallel", "arbitrary")),
    )(qkv, qkv, qkv)

    # ---- K3: proj + residual + LayerNorm2 + chunked MLP + residual --------- #
    out = pl.pallas_call(
        functools.partial(_proj_mlp_kernel, nhc),
        out_shape=jax.ShapeDtypeStruct((T, C), jnp.float32),
        grid=(pl.cdiv(T, TM),),
        in_specs=[
            pl.BlockSpec((TM, C), lambda i: (i, 0)),          # attention tokens (bf16)
            pl.BlockSpec((TM, C), lambda i: (i, 0)),          # residual tokens (f32)
            pl.BlockSpec((C, C), lambda i: (0, 0)),           # proj weight (bf16)
            pl.BlockSpec((1, C), lambda i: (0, 0)),           # proj bias
            pl.BlockSpec((1, C), lambda i: (0, 0)),           # norm2 gamma
            pl.BlockSpec((1, C), lambda i: (0, 0)),           # norm2 beta
            pl.BlockSpec((nhc, C, hc), lambda i: (0, 0, 0)),  # fc1 weight chunks (bf16)
            pl.BlockSpec((nhc, 1, hc), lambda i: (0, 0, 0)),  # fc1 bias chunks
            pl.BlockSpec((nhc, hc, C), lambda i: (0, 0, 0)),  # fc2 weight chunks (bf16)
            pl.BlockSpec((1, C), lambda i: (0, 0)),           # fc2 bias
        ],
        out_specs=pl.BlockSpec((TM, C), lambda i: (i, 0)),
        compiler_params=pltpu.CompilerParams(dimension_semantics=("parallel",)),
    )(attn, tokens, prep["proj_w"], prep["proj_b"], prep["g2"], prep["b2"],
      prep["w1"], prep["fb1"], prep["w2"], prep["fb2"])

    return out.reshape(B, L, C)


# ---------------------------- pure-JAX reference --------------------------- #
def reference_forward(x, params, H, W, num_heads):
    B, L, C = x.shape
    hd = C // num_heads
    scale = hd ** (-0.5)

    def ln(v, g, b):
        mu = v.mean(-1, keepdims=True)
        var = ((v - mu) ** 2).mean(-1, keepdims=True)
        return (v - mu) / jnp.sqrt(var + EPS) * g + b

    xn = ln(x, params["g1"], params["b1"])
    q = (xn @ params["q_w"]).reshape(B, L, num_heads, hd).transpose(0, 2, 1, 3)
    kv = (xn @ params["kv_w"]).reshape(B, L, 2, num_heads, hd).transpose(2, 0, 3, 1, 4)
    k, v = kv[0], kv[1]
    attn = (q @ jnp.swapaxes(k, -2, -1)) * scale
    attn = jax.nn.softmax(attn, axis=-1)
    o = jnp.matmul(attn, v).transpose(0, 2, 1, 3).reshape(B, L, C)
    o = o @ params["proj_w"] + params["proj_b"]
    x1 = x + o
    xn2 = ln(x1, params["g2"], params["b2"])
    h = jax.nn.gelu(xn2 @ params["fc1_w"] + params["fc1_b"], approximate=False)
    y = h @ params["fc2_w"] + params["fc2_b"]
    return x1 + y


# ----------------------------------- main ----------------------------------- #
if __name__ == "__main__":
    B, H, W = 2, 16, 16
    C, num_heads, mlp_ratio = 256, 2, 4.0      # head_dim = 128 (lane-aligned)
    L = H * W
    hidden = int(C * mlp_ratio)

    key = jax.random.PRNGKey(0)
    ks = jax.random.split(key, 12)
    x = jax.random.normal(ks[0], (B, L, C), jnp.float32)

    params = {
        "g1": 1.0 + 0.02 * jax.random.normal(ks[1], (C,), jnp.float32),
        "b1": 0.02 * jax.random.normal(ks[2], (C,), jnp.float32),
        "q_w": 0.02 * jax.random.normal(ks[3], (C, C), jnp.float32),
        "kv_w": 0.02 * jax.random.normal(ks[4], (C, 2 * C), jnp.float32),
        "proj_w": 0.02 * jax.random.normal(ks[5], (C, C), jnp.float32),
        "proj_b": 0.02 * jax.random.normal(ks[6], (C,), jnp.float32),
        "g2": 1.0 + 0.02 * jax.random.normal(ks[7], (C,), jnp.float32),
        "b2": 0.02 * jax.random.normal(ks[8], (C,), jnp.float32),
        "fc1_w": 0.02 * jax.random.normal(ks[9], (C, hidden), jnp.float32),
        "fc1_b": 0.02 * jax.random.normal(ks[10], (hidden,), jnp.float32),
        "fc2_w": 0.02 * jax.random.normal(ks[11], (hidden, C), jnp.float32),
        "fc2_b": jnp.zeros((C,), jnp.float32),
    }

    prep = prepare_block_params(params, num_heads)          # one-time weight prep
    out = block_forward(x, prep, H, W, token_tile=256, q_tile=128, kv_tile=128)
    out = jax.block_until_ready(out)

    ref = reference_forward(x, params, H, W, num_heads)
    # bf16 MXU operands with f32 accumulation (LN/softmax/GELU/residuals in f32);
    # approx reciprocal in the softmax denominator -> loosened tolerance.
    np.testing.assert_allclose(np.asarray(out), np.asarray(ref), rtol=2e-2, atol=2e-2)

    print("KERNEL_OK")
</pallas_src>

<mosaic_0001>
module attributes {stable_mosaic.version = 11 : i64} {
  func.func @_ln_qkv_kernel(%arg0: i32, %arg1: memref<256x256xf32, #tpu.memory_space<vmem>>, %arg2: memref<1x256xf32, #tpu.memory_space<vmem>>, %arg3: memref<1x256xf32, #tpu.memory_space<vmem>>, %arg4: memref<256x768xbf16, #tpu.memory_space<vmem>>, %arg5: memref<256x768xbf16, #tpu.memory_space<vmem>>) attributes {dimension_semantics = [#tpu.dimension_semantics<parallel>], iteration_bounds = array<i64: 2>, scalar_prefetch = 0 : i64, scratch_operands = 0 : i64, tpu.core_type = #tpu.core_type<tc>, window_params = [{transform_indices = @transform_0, window_bounds = array<i64: 256, 256>}, {pipeline_mode = #tpu.pipeline_mode<synchronous>, transform_indices = @transform_1, window_bounds = array<i64: 1, 256>}, {pipeline_mode = #tpu.pipeline_mode<synchronous>, transform_indices = @transform_2, window_bounds = array<i64: 1, 256>}, {pipeline_mode = #tpu.pipeline_mode<synchronous>, transform_indices = @transform_3, window_bounds = array<i64: 256, 768>}, {transform_indices = @transform_4, window_bounds = array<i64: 256, 768>}]} {
    %c0 = arith.constant 0 : index
    %c0_0 = arith.constant 0 : index
    %0 = vector.load %arg1[%c0, %c0_0] : memref<256x256xf32, #tpu.memory_space<vmem>>, vector<256x256xf32>
    %c0_1 = arith.constant 0 : index
    %c0_2 = arith.constant 0 : index
    %1 = vector.load %arg2[%c0_1, %c0_2] : memref<1x256xf32, #tpu.memory_space<vmem>>, vector<1x256xf32>
    %2 = vector.shape_cast %1 : vector<1x256xf32> to vector<256xf32>
    %c0_3 = arith.constant 0 : index
    %c0_4 = arith.constant 0 : index
    %3 = vector.load %arg3[%c0_3, %c0_4] : memref<1x256xf32, #tpu.memory_space<vmem>>, vector<1x256xf32>
    %4 = vector.shape_cast %3 : vector<1x256xf32> to vector<256xf32>
    %cst = arith.constant dense<0.000000e+00> : vector<256xf32>
    %5 = vector.multi_reduction <add>, %0, %cst [1] : vector<256x256xf32> to vector<256xf32>
    %6 = vector.shape_cast %5 : vector<256xf32> to vector<256x1xf32>
    %cst_5 = arith.constant 2.560000e+02 : f32
    %7 = vector.broadcast %cst_5 : f32 to vector<256x1xf32>
    %8 = arith.divf %6, %7 : vector<256x1xf32>
    %9 = vector.broadcast %8 : vector<256x1xf32> to vector<256x256xf32>
    %10 = arith.subf %0, %9 : vector<256x256xf32>
    %11 = arith.mulf %10, %10 : vector<256x256xf32>
    %cst_6 = arith.constant dense<0.000000e+00> : vector<256xf32>
    %12 = vector.multi_reduction <add>, %11, %cst_6 [1] : vector<256x256xf32> to vector<256xf32>
    %13 = vector.shape_cast %12 : vector<256xf32> to vector<256x1xf32>
    %cst_7 = arith.constant 2.560000e+02 : f32
    %14 = vector.broadcast %cst_7 : f32 to vector<256x1xf32>
    %15 = arith.divf %13, %14 : vector<256x1xf32>
    %16 = vector.broadcast %8 : vector<256x1xf32> to vector<256x256xf32>
    %17 = arith.subf %0, %16 : vector<256x256xf32>
    %cst_8 = arith.constant 9.99999974E-6 : f32
    %18 = vector.broadcast %cst_8 : f32 to vector<256x1xf32>
    %19 = arith.addf %15, %18 : vector<256x1xf32>
    %20 = math.rsqrt %19 : vector<256x1xf32>
    %21 = vector.broadcast %20 : vector<256x1xf32> to vector<256x256xf32>
    %22 = arith.mulf %17, %21 : vector<256x256xf32>
    %23 = vector.shape_cast %2 : vector<256xf32> to vector<1x256xf32>
    %24 = vector.broadcast %23 : vector<1x256xf32> to vector<256x256xf32>
    %25 = arith.mulf %22, %24 : vector<256x256xf32>
    %26 = vector.shape_cast %4 : vector<256xf32> to vector<1x256xf32>
    %27 = vector.broadcast %26 : vector<1x256xf32> to vector<256x256xf32>
    %28 = arith.addf %25, %27 : vector<256x256xf32>
    %29 = arith.truncf %28 : vector<256x256xf32> to vector<256x256xbf16>
    %c0_9 = arith.constant 0 : index
    %c0_10 = arith.constant 0 : index
    %30 = vector.load %arg4[%c0_9, %c0_10] : memref<256x768xbf16, #tpu.memory_space<vmem>>, vector<256x768xbf16>
    %cst_11 = arith.constant dense<0.000000e+00> : vector<256x768xf32>
    %31 = tpu.matmul %29, %30, %cst_11 {dimension_numbers = #tpu.dot_dimension_numbers<[1], [0], [0], [1], [0, 0, 1, 1], [], []>} : vector<256x256xbf16>, vector<256x768xbf16>, vector<256x768xf32> -> vector<256x768xf32>
    %32 = arith.truncf %31 : vector<256x768xf32> to vector<256x768xbf16>
    %c0_12 = arith.constant 0 : index
    %c0_13 = arith.constant 0 : index
    %33 = vector.load %arg5[%c0_12, %c0_13] : memref<256x768xbf16, #tpu.memory_space<vmem>>, vector<256x768xbf16>
    tpu.vector_store %arg5[%c0_12, %c0_13], %32 {strides = array<i32>} : memref<256x768xbf16, #tpu.memory_space<vmem>>, vector<256x768xbf16>,
    return
  }
  func.func @transform_0(%arg0: i32) -> (i32, i32) {
    %c0_i32 = arith.constant 0 : i32
    %c0_i32_0 = arith.constant 0 : i32
    return %arg0, %c0_i32 : i32, i32
  }
  func.func @transform_1(%arg0: i32) -> (i32, i32) {
    %c0_i32 = arith.constant 0 : i32
    %c0_i32_0 = arith.constant 0 : i32
    %c0_i32_1 = arith.constant 0 : i32
    return %c0_i32, %c0_i32_0 : i32, i32
  }
  func.func @transform_2(%arg0: i32) -> (i32, i32) {
    %c0_i32 = arith.constant 0 : i32
    %c0_i32_0 = arith.constant 0 : i32
    %c0_i32_1 = arith.constant 0 : i32
    return %c0_i32, %c0_i32_0 : i32, i32
  }
  func.func @transform_3(%arg0: i32) -> (i32, i32) {
    %c0_i32 = arith.constant 0 : i32
    %c0_i32_0 = arith.constant 0 : i32
    %c0_i32_1 = arith.constant 0 : i32
    return %c0_i32, %c0_i32_0 : i32, i32
  }
  func.func @transform_4(%arg0: i32) -> (i32, i32) {
    %c0_i32 = arith.constant 0 : i32
    %c0_i32_0 = arith.constant 0 : i32
    return %arg0, %c0_i32 : i32, i32
  }
}

</mosaic_0001>

<bundles_post_ra>
// kernel: tpu_custom_call.1
= control target key start
LH: loop header
LB: loop body
LE: loop exit
PB: predicated region body
PF: predicated region fallthrough
CT: control target
= control target key end

     0   :  { %9 = vsyncpa [#allocation3], 0  ;;  %s5018_s0 = inlined_call_operand.hbm [shape: f32[512,256], index: 0, kind: input, shape index: {}]   ;;  %s5019_s1 = inlined_call_operand.vmem [shape: f32[1,256], index: 1, kind: input, shape index: {}]   ;;  %s5020_s2 = inlined_call_operand.vmem [shape: f32[1,256], index: 2, kind: input, shape index: {}]   ;;  %s5021_s3 = inlined_call_operand.hbm [shape: bf16[256,768], index: 3, kind: input, shape index: {}]   ;;  %s5022_s4 = inlined_call_operand.hbm [shape: bf16[512,768], index: 4, kind: output, shape index: {}]  }
   0x1   :  { %11 = vsyncpa [#allocation3 + $0x1], 0 }
   0x2   :  { %12 = vsyncpa [#allocation6], 0 }
   0x3   :  { %13 = vsyncpa [#allocation4], 0 }
   0x4   :  { %15 = vsyncpa [#allocation4 + $0x1], 0  ;;  %s3695_s15 = smov 0   ;;  %s3697_s16 = smov 0  }
   0x5   :  { %s3699_s17 = smov 0   ;;  %s3701_s18 = smov 0  }
   0x6 LB: > { %s3716_s19 = sadd.s32 4294967295, %s3659_s18   ;;  %s2920_s20 = sadd.s32 4294967294, %s3659_s18   ;;  %s3659_s18 = sphi %s3701_s18, %s5160_s18   ;;  %s3655_s17 = sphi %s3699_s17, %s5159_s17   ;;  %s3651_s16 = sphi %s3697_s16, %s5158_s16   ;;  %s3647_s15 = sphi %s3695_s15, %s5157_s15  }
   0x7   : > { %p41_p0 = scmp.ne.s32.totalorder %s3651_s16, %s3647_s15  ;;  %p5023_p1 = scmp.eq.s32.totalorder %s3716_s19, 0 }
   0x8   : > { %p134_p3 = scmp.eq.s32.totalorder %s2920_s20, 1  ;;  %p2921_p5 = scmp.ge.s32.totalorder %s3659_s18, 1 }
   0x9   : > { %p3725_p4 = por %p5023_p1, %p41_p0  ;;  %p141_p7 = scmp.lt.s32.totalorder %s3659_s18, 3 }
   0xa   : > { %p3730_p6 = por %p134_p3, %p41_p0  ;;  %s3661_s24 = smov [#allocation5]  }
   0xb   : > { %s5066_s21 = scalar_select %p3725_p4, 1, 0 }
   0xc   : > { %s5067_s22 = scalar_select %p3730_p6, 1, 0 }
   0xd   : > { %p3735_p8 = pnand %p2921_p5, %p141_p7  ;;  %s159_s25 = sshll.u32 %s3661_s24, 4  ;;  %s3739_s25 = int_to_ptr.vmem [resolvable:$true] %s159_s25 }
   0xe   : > { %s3751_s27 = sadd.s32 1, %s3659_s18   ;;  %s28_s28 = sadd.s32 1, %s3655_s17 }
   0xf   : > { %s5068_s23 = scalar_select %p3735_p8, 1, 0 }
  0x10   : > { %p3268_p9 = pneg %p3735_p8  ;;  %s25_s29 = ssub.s32 %s3659_s18, %s3751_s27 }
  0x11   : > { %s3531_s6 = scalar_lea.hbm %s5021_s3, 12288 }
  0x12   : > { %p3746_p11 = pnand %p3268_p9, %p5023_p1  ;;  %p3532_p12 = scmp.ne.s32.totalorder %s5021_s3, %s3531_s6 }
  0x13   : > { %p3538_p5 = scmp.lt.u32.totalorder %s3531_s6, %s5021_s3 }
  0x14   : > { %p3533_p13 = pneg %p3746_p11 }
  0x16   : > { %p3534_p0 = pnand %p3533_p13, %p3532_p12 }
  0x18   : > { %p3535_p3 = pneg %p3534_p0 }
  0x1a   : > { %p3540_p7 = pnand %p3538_p5, %p3535_p3 }
  0x1c   : > { %3543 = shalt.err (!%p3540_p7)
}
  0x1d   : > { %s3544_s11 = scalar_lea.vmem %s3739_s25, 12288  ;;  %p3552_p2 = scmp.lt.s32.totalorder %s3739_s25, %s3739_s25 }
  0x1e   : > { %p3545_p9 = scmp.ne.s32.totalorder %s3739_s25, %s3544_s11  ;;  %p3553_p6 = scmp.lt.s32.totalorder %s3544_s11, %s3544_s11 }
  0x20   : > { %p3547_p10 = pnand %p3545_p9, %p3533_p13  ;;  %p3554_p4 = por %p3553_p6, %p3552_p2 }
  0x22   : > { %p3548_p1 = pneg %p3547_p10 }
  0x24   : > { %p3555_p8 = pnand %p3554_p4, %p3548_p1 }
  0x26   : > { %3558 = shalt.err (!%p3555_p8)
}
  0x27   : > { %s3662_s12 = smov 384   ;;  %s3663_s13 = smov 24  }
  0x28   : > { %3271 = dma.hbm_to_vmem [thread:$0]  (!%p3746_p11), %s5021_s3, 12288, %s3739_s25, [#allocation6], %s3662_s12, %s3662_s12, %s3663_s13  }
  0x29   : > { %p26_p2 = scmp.eq.s32.totalorder %s25_s29, 0  ;;  %p35_p1 = scmp.ne.s32.totalorder %s3655_s17, %s3651_s16 }
  0x2a   : > { %p36_p4 = scmp.eq.s32.totalorder %s3659_s18, 0  ;;  %p3281_p6 = scmp.lt.s32.totalorder %s3659_s18, 2 }
  0x2b   : > { %s3782_s24 = scalar_select %p26_p2, %s3655_s17, %s28_s28  }
  0x2c   : > { %p37_p8 = por %p36_p4, %p35_p1  ;;  %p5070_p10 = scmp.eq.s32.totalorder %s3716_s19, 1 }
  0x2d   : > { %s173_s5 = sand.u32 1, %s3655_s17   ;;  %s3129_s6 = sshll.u32 %s3659_s18, 13 }
  0x2e   : > { %p3786_p12 = por %p5070_p10, %p35_p1  ;;  %s2924_s7 = sshll.u32 %s173_s5, 9 }
  0x2f   : > { %s3795_s9 = scalar_lea.hbm %s5018_s0, %s3129_s6  ;;  %s177_s25 = scalar_lea.vmem [#allocation2], %s2924_s7 }
  0x30   : > { %s185_s28 = sshll.u32 %s177_s25, 4  ;;  %p3797_p11 = pnand %p3281_p6, %p37_p8  ;;  %s3801_s28 = int_to_ptr.vmem [resolvable:$true] %s185_s28 }
  0x31   : > { %s3803_s10 = scalar_lea.sflag [#allocation3], %s173_s5  ;;  %s3559_s11 = scalar_lea.hbm %s3795_s9, 8192 }
  0x32   : > { %p3560_p13 = scmp.ne.s32.totalorder %s3795_s9, %s3559_s11  ;;  %p3561_p0 = pneg %p3797_p11 }
  0x33   : > { %s3564_s14 = scalar_lea.hbm %s5018_s0, 16384  ;;  %p3565_p7 = scmp.lt.u32.totalorder %s3795_s9, %s5018_s0 }
  0x34   : > { %p3562_p3 = pnand %p3561_p0, %p3560_p13  ;;  %p3566_p9 = scmp.lt.u32.totalorder %s3564_s14, %s3559_s11 }
  0x35   : > { %p3568_p1 = scmp.lt.u32.totalorder %s3559_s11, %s3795_s9 }
  0x36   : > { %p3563_p5 = pneg %p3562_p3  ;;  %p3567_p2 = por %p3566_p9, %p3565_p7 }
  0x38   : > { %p3569_p4 = por %p3568_p1, %p3567_p2 }
  0x3a   : > { %p3570_p6 = pnand %p3569_p4, %p3563_p5 }
  0x3c   : > { %3573 = shalt.err (!%p3570_p6)
}
  0x3d   : > { %s3574_s5 = scalar_lea.vmem %s3801_s28, 8192  ;;  %s3664_s7 = smov [#allocation2]  }
  0x3e   : > { %p3575_p8 = scmp.ne.s32.totalorder %s3801_s28, %s3574_s5  ;;  %s3579_s26 = sshll.u32 %s3664_s7, 4  ;;  %s3580_s26 = int_to_ptr.vmem [resolvable:$false] %s3579_s26 }
  0x3f   : > { %s3581_s8 = scalar_lea.vmem %s3580_s26, 16384  ;;  %p3582_p3 = scmp.lt.s32.totalorder %s3801_s28, %s3580_s26 }
  0x40   : > { %p3577_p10 = pnand %p3575_p8, %p3561_p0  ;;  %p3583_p7 = scmp.lt.s32.totalorder %s3581_s8, %s3574_s5 }
  0x42   : > { %p3578_p13 = pneg %p3577_p10  ;;  %p3584_p9 = por %p3583_p7, %p3582_p3 }
  0x44   : > { %p3585_p2 = pnand %p3584_p9, %p3578_p13 }
  0x46   : > { %3588 = shalt.err (!%p3585_p2)
}
  0x47   : > { %s3665_s25 = smov 256   ;;  %s3666_s11 = smov 16  }
  0x48   : > { %3275 = dma.hbm_to_vmem [thread:$0]  (!%p3797_p11), %s3795_s9, 8192, %s3801_s28, %s3803_s10, %s3665_s25, %s3665_s25, %s3666_s11  }
  0x49   : > { %p5073_p0 = scmp.ne.s32.totalorder %s5068_s23, 0 }
  0x4b   : > { %197 = sbr.rel (%p5073_p0) target bundleno = 844 (0x34c), region = 36 }
  0x52   : > { %s3834_s12 = sand.u32 1, %s3651_s16   ;;  %p5074_p5 = scmp.ne.s32.totalorder %s5066_s21, 0 }
  0x53   : > { %s2929_s13 = sshll.u32 %s3834_s12, 9  ;;  %s200_s14 = scalar_lea.sflag [#allocation3], %s3834_s12 }
  0x54   : > { %s3838_s20 = scalar_lea.vmem [#allocation2], %s2929_s13 }
  0x55   : > { %3634 = dma.done.wait (%p5074_p5), %s200_s14, 8192  }
  0x56   : > { %3636 = vsyncadd (%p5074_p5), %s200_s14, 4294959104  ;;  %p5075_p11 = scmp.eq.s32.totalorder %s3716_s19, 0 }
  0x58   : > { %3638 = dma.done.wait (%p5075_p11), [#allocation6], 12288   ;;  %p5076_p1 = pmov %p5075_p11 }
  0x59   : > { %v3849_v0 = vld [vmem:[%s3838_s20] sm:$0xff]  ;;  %v3852_v1 = vld [vmem:[%s3838_s20 + $0x8] sm:$0xff]  ;;  %v3863_v5 = vld [vmem:[%s3838_s20 + $0x10] sm:$0xff]  ;;  %s3258_s29 = smul.u32 768, %s3834_s12  ;;  %s3667_s11 = smov [#allocation7]  }
  0x5a   : > { %3640 = vsyncadd (%p5076_p1), [#allocation6], 4294955008  ;;  %v3855_v2 = vld [vmem:[%s3838_s20 + $0x100] sm:$0xff]  ;;  %v300_v3 = vadd.f32 %v3852_v1, %v3849_v0  ;;  %v3860_v4 = vld [vmem:[%s3838_s20 + $0x108] sm:$0xff]  ;;  %s3259_s6 = smul.u32 12288, %s3716_s19  ;;  %s2823_s19 = scalar_lea.sflag [#allocation4], %s3834_s12 }
  0x5b   : > { %v3866_v6 = vld [vmem:[%s3838_s20 + $0x18] sm:$0xff]  ;;  %v348_v7 = vadd.f32 %v3860_v4, %v3855_v2  ;;  %v3871_v8 = vld [vmem:[%s3838_s20 + $0x110] sm:$0xff]  ;;  %v3881_v12 = vld [vmem:[%s3838_s20 + $0x20] sm:$0xff]  ;;  %s4869_s10 = scalar_lea.vmem [#allocation7], %s3258_s29  ;;  %s3593_s13 = sshll.u32 %s3667_s11, 4  ;;  %s3594_s13 = int_to_ptr.vmem [resolvable:$false] %s3593_s13 }
  0x5c   : > { %v3874_v9 = vld [vmem:[%s3838_s20 + $0x118] sm:$0xff]  ;;  %301 = vadd.xlane.f32.xlu0 %v300_v3  ;;  %v303_v10 = vadd.f32 %v3866_v6, %v3863_v5  ;;  %v3884_v13 = vld [vmem:[%s3838_s20 + $0x28] sm:$0xff]  ;;  %v3887_v14 = vld [vmem:[%s3838_s20 + $0x30] sm:$0xff]  ;;  %s2837_s5 = sshll.u32 %s4869_s10, 4  ;;  %s4970_s8 = scalar_lea.hbm %s5022_s4, %s3259_s6  ;;  %s4973_s5 = int_to_ptr.vmem [resolvable:$true] %s2837_s5 }
  0x5d   : > { %349 = vadd.xlane.f32.xlu1 %v348_v7  ;;  %v351_v11 = vadd.f32 %v3874_v9, %v3871_v8  ;;  %v3890_v15 = vld [vmem:[%s3838_s20 + $0x38] sm:$0xff]  ;;  %v306_v16 = vadd.f32 %v3884_v13, %v3881_v12  ;;  %v3897_v18 = vld [vmem:[%s3838_s20 + $0x120] sm:$0xff]  ;;  %v3900_v19 = vld [vmem:[%s3838_s20 + $0x128] sm:$0xff]  ;;  %s3589_s25 = scalar_lea.vmem %s4973_s5, 12288  ;;  %s3595_s14 = scalar_lea.vmem %s3594_s13, 24576 }
  0x5e   : > { %v309_v17 = vadd.f32 %v3890_v15, %v3887_v14  ;;  %v3903_v20 = vld [vmem:[%s3838_s20 + $0x130] sm:$0xff]  ;;  %v3906_v21 = vld [vmem:[%s3838_s20 + $0x138] sm:$0xff]  ;;  %v354_v22 = vadd.f32 %v3900_v19, %v3897_v18  ;;  %v3913_v24 = vld [vmem:[%s3838_s20 + $0x40] sm:$0xff]  ;;  %p3590_p4 = scmp.ne.s32.totalorder %s4973_s5, %s3589_s25  ;;  %p3596_p10 = scmp.lt.s32.totalorder %s4973_s5, %s3594_s13 }
  0x5f   : > { %v357_v23 = vadd.f32 %v3906_v21, %v3903_v20  ;;  %v3916_v25 = vld [vmem:[%s3838_s20 + $0x48] sm:$0xff]  ;;  %v3919_v26 = vld [vmem:[%s3838_s20 + $0x50] sm:$0xff]  ;;  %v3922_v27 = vld [vmem:[%s3838_s20 + $0x58] sm:$0xff]  ;;  %p3597_p13 = scmp.lt.s32.totalorder %s3595_s14, %s3589_s25 }
  0x60   : > { %304 = vadd.xlane.f32.xlu0 %v303_v10  ;;  %v312_v28 = vadd.f32 %v3916_v25, %v3913_v24  ;;  %v315_v29 = vadd.f32 %v3922_v27, %v3919_v26  ;;  %v3929_v30 = vld [vmem:[%s3838_s20 + $0x140] sm:$0xff]  ;;  %v3932_v31 = vld [vmem:[%s3838_s20 + $0x148] sm:$0xff]  ;;  %v3935_v32 = vld [vmem:[%s3838_s20 + $0x150] sm:$0xff]  ;;  %p3591_p6 = pnand %p3590_p4, %p3786_p12 }
  0x61   : > { %352 = vadd.xlane.f32.xlu1 %v351_v11  ;;  %v3938_v33 = vld [vmem:[%s3838_s20 + $0x158] sm:$0xff]  ;;  %v360_v34 = vadd.f32 %v3932_v31, %v3929_v30  ;;  %v3945_v36 = vld [vmem:[%s3838_s20 + $0x60] sm:$0xff]  ;;  %v3948_v37 = vld [vmem:[%s3838_s20 + $0x68] sm:$0xff]  ;;  %p3598_p3 = por %p3597_p13, %p3596_p10 }
  0x62   : > { %v363_v35 = vadd.f32 %v3938_v33, %v3935_v32  ;;  %v3951_v38 = vld [vmem:[%s3838_s20 + $0x70] sm:$0xff]  ;;  %v3954_v39 = vld [vmem:[%s3838_s20 + $0x78] sm:$0xff]  ;;  %v3957_v40 = vld [vmem:[%s3838_s20 + $0x160] sm:$0xff]  ;;  %v318_v42 = vadd.f32 %v3948_v37, %v3945_v36  ;;  %p3592_p8 = pneg %p3591_p6 }
  0x63   : > { %v3960_v41 = vld [vmem:[%s3838_s20 + $0x168] sm:$0xff]  ;;  %v3965_v43 = vld [vmem:[%s3838_s20 + $0x170] sm:$0xff]  ;;  %v3968_v44 = vld [vmem:[%s3838_s20 + $0x178] sm:$0xff]  ;;  %v321_v45 = vadd.f32 %v3954_v39, %v3951_v38 }
  0x64   : > { %307 = vadd.xlane.f32.xlu0 %v306_v16  ;;  %v3973_v46 = vld [vmem:[%s3838_s20 + $0x80] sm:$0xff]  ;;  %v3976_v47 = vld [vmem:[%s3838_s20 + $0x88] sm:$0xff]  ;;  %v366_v48 = vadd.f32 %v3960_v41, %v3957_v40  ;;  %v3981_v49 = vld [vmem:[%s3838_s20 + $0x90] sm:$0xff]  ;;  %v369_v51 = vadd.f32 %v3968_v44, %v3965_v43  ;;  %p3599_p7 = pnand %p3598_p3, %p3592_p8 }
  0x65   : > { %310 = vadd.xlane.f32.xlu1 %v309_v17  ;;  %v3984_v50 = vld [vmem:[%s3838_s20 + $0x98] sm:$0xff]  ;;  %v3989_v52 = vld [vmem:[%s3838_s20 + $0x180] sm:$0xff]  ;;  %v3992_v53 = vld [vmem:[%s3838_s20 + $0x188] sm:$0xff]  ;;  %v324_v54 = vadd.f32 %v3976_v47, %v3973_v46 }
  0x66   : > { %v3997_v55 = vld [vmem:[%s3838_s20 + $0x190] sm:$0xff]  ;;  %v4000_v56 = vld [vmem:[%s3838_s20 + $0x198] sm:$0xff]  ;;  %v327_v57 = vadd.f32 %v3984_v50, %v3981_v49  ;;  %v4005_v58 = vld [vmem:[%s3838_s20 + $0xa0] sm:$0xff]  ;;  %v372_v60 = vadd.f32 %v3992_v53, %v3989_v52 }
  0x67   : > { %v4008_v59 = vld [vmem:[%s3838_s20 + $0xa8] sm:$0xff]  ;;  %v4013_v61 = vld [vmem:[%s3838_s20 + $0xb0] sm:$0xff]  ;;  %v4016_v62 = vld [vmem:[%s3838_s20 + $0xb8] sm:$0xff]  ;;  %v375_v63 = vadd.f32 %v4000_v56, %v3997_v55 }
  0x68   : > { %355 = vadd.xlane.f32.xlu0 %v354_v22  ;;  %v4021_v3 = vld [vmem:[%s3838_s20 + $0x1a0] sm:$0xff]  ;;  %v4024_v7 = vld [vmem:[%s3838_s20 + $0x1a8] sm:$0xff]  ;;  %v330_v10 = vadd.f32 %v4008_v59, %v4005_v58  ;;  %v4029_v11 = vld [vmem:[%s3838_s20 + $0x1b0] sm:$0xff]  ;;  %v333_v17 = vadd.f32 %v4016_v62, %v4013_v61 }
  0x69   : > { %358 = vadd.xlane.f32.xlu1 %v357_v23  ;;  %v4032_v16 = vld [vmem:[%s3838_s20 + $0x1b8] sm:$0xff]  ;;  %v4037_v22 = vld [vmem:[%s3838_s20 + $0xc0] sm:$0xff]  ;;  %v4040_v23 = vld [vmem:[%s3838_s20 + $0xc8] sm:$0xff] }
  0x6a   : > { %5077 = vst [vmem:[#allocation11_spill] sm:$0xff] %v4040_v23 }
  0x6c   : > { %313 = vadd.xlane.f32.xlu0 %v312_v28  ;;  %v378_v28 = vadd.f32 %v4024_v7, %v4021_v3 }
  0x6d   : > { %316 = vadd.xlane.f32.xlu1 %v315_v29  ;;  %v4045_v29 = vld [vmem:[%s3838_s20 + $0xd0] sm:$0xff] }
  0x6e   : > { %5078 = vst [vmem:[#allocation12_spill] sm:$0xff] %v4045_v29 }
  0x70   : > { %361 = vadd.xlane.f32.xlu0 %v360_v34  ;;  %v4048_v34 = vld [vmem:[%s3838_s20 + $0xd8] sm:$0xff] }
  0x71   : > { %364 = vadd.xlane.f32.xlu1 %v363_v35  ;;  %5079 = vst [vmem:[#allocation13_spill] sm:$0xff] %v4048_v34  ;;  %v381_v35 = vadd.f32 %v4032_v16, %v4029_v11 }
  0x74   : > { %319 = vadd.xlane.f32.xlu0 %v318_v42  ;;  %v4053_v42 = vld [vmem:[%s3838_s20 + $0x1c0] sm:$0xff] }
  0x75   : > { %322 = vadd.xlane.f32.xlu1 %v321_v45  ;;  %v4056_v45 = vld [vmem:[%s3838_s20 + $0x1c8] sm:$0xff] }
  0x76   : > { %5080 = vst [vmem:[#allocation14_spill] sm:$0xff] %v4056_v45 }
  0x78   : > { %367 = vadd.xlane.f32.xlu0 %v366_v48  ;;  %v336_v48 = vadd.f32 %v4040_v23, %v4037_v22  ;;  %v4092_v23 = vld [vmem:[%s3838_s20 + $0x1e8] sm:$0xff] }
  0x79   : > { %370 = vadd.xlane.f32.xlu1 %v369_v51  ;;  %v4061_v51 = vld [vmem:[%s3838_s20 + $0x1d0] sm:$0xff]  ;;  %5086 = vst [vmem:[#allocation20_spill] sm:$0xff] %v4092_v23 }
  0x7c   : > { %325 = vadd.xlane.f32.xlu0 %v324_v54  ;;  %v4064_v54 = vld [vmem:[%s3838_s20 + $0x1d8] sm:$0xff] }
  0x7d   : > { %328 = vadd.xlane.f32.xlu1 %v327_v57  ;;  %5081 = vst [vmem:[#allocation15_spill] sm:$0xff] %v4064_v54  ;;  %v339_v57 = vadd.f32 %v4048_v34, %v4045_v29 }
  0x80   : > { %373 = vadd.xlane.f32.xlu0 %v372_v60  ;;  %v4069_v60 = vld [vmem:[%s3838_s20 + $0xe0] sm:$0xff] }
  0x81   : > { %376 = vadd.xlane.f32.xlu1 %v375_v63  ;;  %v4072_v63 = vld [vmem:[%s3838_s20 + $0xe8] sm:$0xff] }
  0x82   : > { %5082 = vst [vmem:[#allocation16_spill] sm:$0xff] %v4072_v63  ;;  %v342_v34 = vadd.f32 %v4072_v63, %v4069_v60  ;;  %v3328_v63 = vld [vmem:[#allocation5 + $0x30] ss:$24 sps:$4 sm:$0xff]  }
  0x84   : > { %331 = vadd.xlane.f32.xlu0 %v330_v10  ;;  %v384_v10 = vadd.f32 %v4056_v45, %v4053_v42  ;;  %v4098_v45 = vld [vmem:[%s3838_s20 + $0x1f8] sm:$0xff] }
  0x85   : > { %334 = vadd.xlane.f32.xlu1 %v333_v17  ;;  %v387_v17 = vadd.f32 %v4064_v54, %v4061_v51  ;;  %5088 = vst [vmem:[#allocation22_spill] sm:$0xff] %v4098_v45 }
  0x88   : > { %379 = vadd.xlane.f32.xlu0 %v378_v28  ;;  %v4079_v28 = vld [vmem:[%s3838_s20 + $0xf0] sm:$0xff] }
  0x89   : > { %382 = vadd.xlane.f32.xlu1 %v381_v35  ;;  %5083 = vst [vmem:[#allocation17_spill] sm:$0xff] %v4079_v28  ;;  %v4082_v35 = vld [vmem:[%s3838_s20 + $0xf8] sm:$0xff] }
  0x8a   : > { %5084 = vst [vmem:[#allocation18_spill] sm:$0xff] %v4082_v35  ;;  %v345_v29 = vadd.f32 %v4082_v35, %v4079_v28  ;;  %v3325_v35 = vld [vmem:[#allocation5] ss:$24 sps:$4 sm:$0xff]   ;;  %v3326_v28 = vld [vmem:[#allocation5 + $0x34] ss:$24 sps:$4 sm:$0xff]  }
  0x8c   : > { %337 = vadd.xlane.f32.xlu0 %v336_v48  ;;  %v4089_v48 = vld [vmem:[%s3838_s20 + $0x1e0] sm:$0xff] }
  0x8d   : > { %340 = vadd.xlane.f32.xlu1 %v339_v57  ;;  %5085 = vst [vmem:[#allocation19_spill] sm:$0xff] %v4089_v48  ;;  %v4095_v57 = vld [vmem:[%s3838_s20 + $0x1f0] sm:$0xff]  ;;  %v390_v54 = vadd.f32 %v4092_v23, %v4089_v48  ;;  %v3331_v23 = vld [vmem:[#allocation5 + $0x60] ss:$24 sps:$4 sm:$0xff]  }
  0x8e   : > { %5087 = vst [vmem:[#allocation21_spill] sm:$0xff] %v4095_v57 }
  0x90   : > { %385 = vadd.xlane.f32.xlu0 %v384_v10  ;;  %v393_v10 = vadd.f32 %v4098_v45, %v4095_v57 }
  0x91   : > { %388 = vadd.xlane.f32.xlu1 %v387_v17  ;;  %v3323_v17 = vld [vmem:[#allocation5 + $0x4] ss:$24 sps:$4 sm:$0xff]  }
  0x92   : > { %1571 = vmatprep.subr.bf16.mxu0 %v3323_v17  ;;  %3226 = vmatprep.subr.bf16.mxu1 %v3323_v17  ;;  %v3337_v17 = vld [vmem:[#allocation5 + $0xc0] ss:$24 sps:$4 sm:$0xff]  }
  0x93   : > { %1572 = vmatpush1.bf16.msra.mxu0 %v3325_v35  ;;  %3242 = vmatpush1.bf16.msra.mxu1 %v3325_v35  ;;  %v3338_v35 = vld [vmem:[#allocation5 + $0xf4] ss:$24 sps:$4 sm:$0xff]  }
  0x94   : > { %343 = vadd.xlane.f32.xlu0 %v342_v34  ;;  %1573 = vmatprep.subr.bf16.mxu0 %v3326_v28  ;;  %v3329_v34 = vld [vmem:[#allocation5 + $0x64] ss:$24 sps:$4 sm:$0xff]  }
  0x95   : > { %346 = vadd.xlane.f32.xlu1 %v345_v29  ;;  %3227 = vmatprep.subr.bf16.mxu1 %v3326_v28  ;;  %v3332_v29 = vld [vmem:[#allocation5 + $0x94] ss:$24 sps:$4 sm:$0xff]   ;;  %v3340_v28 = vld [vmem:[#allocation5 + $0xf0] ss:$24 sps:$4 sm:$0xff]  }
  0x97   : > { %1574 = vmatpush1.bf16.msra.mxu0 %v3328_v63  ;;  %3243 = vmatpush1.bf16.msra.mxu1 %v3328_v63  ;;  %v3341_v63 = vld [vmem:[#allocation5 + $0x124] ss:$24 sps:$4 sm:$0xff]  }
  0x98   : > { %391 = vadd.xlane.f32.xlu0 %v390_v54  ;;  %1575 = vmatprep.subr.bf16.mxu0 %v3329_v34  ;;  %v3334_v54 = vld [vmem:[#allocation5 + $0x90] ss:$24 sps:$4 sm:$0xff]  }
  0x99   : > { %394 = vadd.xlane.f32.xlu1 %v393_v10  ;;  %3228 = vmatprep.subr.bf16.mxu1 %v3329_v34  ;;  %v3335_v10 = vld [vmem:[#allocation5 + $0xc4] ss:$24 sps:$4 sm:$0xff]   ;;  %v3343_v34 = vld [vmem:[#allocation5 + $0x120] ss:$24 sps:$4 sm:$0xff]  }
  0x9b   : > { %1576 = vmatpush1.bf16.msra.mxu0 %v3331_v23  ;;  %3244 = vmatpush1.bf16.msra.mxu1 %v3331_v23  ;;  %v3344_v23 = vld [vmem:[#allocation5 + $0x154] ss:$24 sps:$4 sm:$0xff]  }
  0x9c   : > { %1577 = vmatprep.subr.bf16.mxu0 %v3332_v29  ;;  %3229 = vmatprep.subr.bf16.mxu1 %v3332_v29  ;;  %v3346_v29 = vld [vmem:[#allocation5 + $0x150] ss:$24 sps:$4 sm:$0xff]  }
  0x9f   : > { %1578 = vmatpush1.bf16.msra.mxu0 %v3334_v54  ;;  %3245 = vmatpush1.bf16.msra.mxu1 %v3334_v54  ;;  %v3347_v54 = vld [vmem:[#allocation5 + $0x184] ss:$24 sps:$4 sm:$0xff]  }
  0xa0   : > { %1579 = vmatprep.subr.bf16.mxu0 %v3335_v10  ;;  %3230 = vmatprep.subr.bf16.mxu1 %v3335_v10  ;;  %v3349_v10 = vld [vmem:[#allocation5 + $0x180] ss:$24 sps:$4 sm:$0xff]  }
  0xa3   : > { %1580 = vmatpush1.bf16.msra.mxu0 %v3337_v17  ;;  %3246 = vmatpush1.bf16.msra.mxu1 %v3337_v17 }
  0xa4   : > { %1581 = vmatprep.subr.bf16.mxu0 %v3338_v35  ;;  %3231 = vmatprep.subr.bf16.mxu1 %v3338_v35 }
  0xa7   : > { %1582 = vmatpush1.bf16.msra.mxu0 %v3340_v28  ;;  %3247 = vmatpush1.bf16.msra.mxu1 %v3340_v28 }
  0xa8   : > { %1583 = vmatprep.subr.bf16.mxu0 %v3341_v63  ;;  %3232 = vmatprep.subr.bf16.mxu1 %v3341_v63 }
  0xab   : > { %1584 = vmatpush1.bf16.msra.mxu0 %v3343_v34  ;;  %3248 = vmatpush1.bf16.msra.mxu1 %v3343_v34 }
  0xac   : > { %1585 = vmatprep.subr.bf16.mxu0 %v3344_v23  ;;  %3233 = vmatprep.subr.bf16.mxu1 %v3344_v23 }
  0xaf   : > { %1586 = vmatpush1.bf16.msra.mxu0 %v3346_v29  ;;  %3249 = vmatpush1.bf16.msra.mxu1 %v3346_v29 }
  0xb0   : > { %1587 = vmatprep.subr.bf16.mxu0 %v3347_v54  ;;  %3234 = vmatprep.subr.bf16.mxu1 %v3347_v54 }
  0xb3   : > { %1588 = vmatpush1.bf16.msra.mxu0 %v3349_v10  ;;  %3250 = vmatpush1.bf16.msra.mxu1 %v3349_v10 }
  0xe9   : > { %v302_v17 = vpop.xlane.xlu0 %301 }
  0xea   : > { %v397_v35 = vmul.f32 0.00390625, %v302_v17  ;;  %v350_v28 = vpop.xlane.xlu1 %349 }
  0xeb   : > { %v413_v45 = vmul.f32 0.00390625, %v350_v28 }
  0xec   : > { %v4105_v63 = vsub.f32 %v3849_v0, %v397_v35  ;;  %v4108_v34 = vsub.f32 %v3852_v1, %v397_v35 }
  0xed   : > { %v4111_v23 = vsub.f32 %v3855_v2, %v413_v45  ;;  %v4114_v29 = vsub.f32 %v3860_v4, %v413_v45  ;;  %v305_v57 = vpop.xlane.xlu0 %304 }
  0xee   : > { %5089 = vst [vmem:[#allocation23_spill] sm:$0xff] %v4105_v63  ;;  %5090 = vst [vmem:[#allocation24_spill] sm:$0xff] %v4108_v34  ;;  %v398_v54 = vmul.f32 0.00390625, %v305_v57  ;;  %v353_v48 = vpop.xlane.xlu1 %352  ;;  %v493_v10 = vmul.f32 %v4105_v63, %v4105_v63  ;;  %v494_v17 = vmul.f32 %v4108_v34, %v4108_v34 }
  0xef   : > { %5091 = vst [vmem:[#allocation25_spill] sm:$0xff] %v4111_v23  ;;  %5092 = vst [vmem:[#allocation26_spill] sm:$0xff] %v4114_v29  ;;  %v414_v0 = vmul.f32 0.00390625, %v353_v48  ;;  %v525_v1 = vmul.f32 %v4111_v23, %v4111_v23  ;;  %v526_v2 = vmul.f32 %v4114_v29, %v4114_v29 }
  0xf0   : > { %v4125_v35 = vsub.f32 %v3863_v5, %v398_v54  ;;  %v4128_v4 = vsub.f32 %v3866_v6, %v398_v54  ;;  %v557_v45 = vadd.f32 %v494_v17, %v493_v10 }
  0xf1   : > { %v4131_v57 = vsub.f32 %v3871_v8, %v414_v0  ;;  %v4134_v28 = vsub.f32 %v3874_v9, %v414_v0  ;;  %v308_v48 = vpop.xlane.xlu0 %307  ;;  %v605_v34 = vadd.f32 %v526_v2, %v525_v1 }
  0xf2   : > { %v399_v63 = vmul.f32 0.00390625, %v308_v48  ;;  %558 = vadd.xlane.f32.xlu0 %v557_v45  ;;  %v311_v23 = vpop.xlane.xlu1 %310  ;;  %v495_v29 = vmul.f32 %v4125_v35, %v4125_v35  ;;  %v496_v5 = vmul.f32 %v4128_v4, %v4128_v4 }
  0xf3   : > { %v400_v6 = vmul.f32 0.00390625, %v311_v23  ;;  %v527_v54 = vmul.f32 %v4131_v57, %v4131_v57  ;;  %v528_v8 = vmul.f32 %v4134_v28, %v4134_v28 }
  0xf4   : > { %v4145_v9 = vsub.f32 %v3881_v12, %v399_v63  ;;  %v4148_v10 = vsub.f32 %v3884_v13, %v399_v63  ;;  %v560_v17 = vadd.f32 %v496_v5, %v495_v29 }
  0xf5   : > { %v4151_v0 = vsub.f32 %v3887_v14, %v400_v6  ;;  %v4154_v1 = vsub.f32 %v3890_v15, %v400_v6  ;;  %v356_v23 = vpop.xlane.xlu0 %355  ;;  %v608_v48 = vadd.f32 %v528_v8, %v527_v54 }
  0xf6   : > { %v415_v2 = vmul.f32 0.00390625, %v356_v23  ;;  %606 = vadd.xlane.f32.xlu0 %v605_v34  ;;  %561 = vadd.xlane.f32.xlu1 %v560_v17  ;;  %v359_v45 = vpop.xlane.xlu1 %358  ;;  %v497_v12 = vmul.f32 %v4145_v9, %v4145_v9  ;;  %v498_v13 = vmul.f32 %v4148_v10, %v4148_v10 }
  0xf7   : > { %v416_v63 = vmul.f32 0.00390625, %v359_v45  ;;  %v499_v14 = vmul.f32 %v4151_v0, %v4151_v0  ;;  %v500_v15 = vmul.f32 %v4154_v1, %v4154_v1 }
  0xf8   : > { %v4165_v29 = vsub.f32 %v3897_v18, %v415_v2  ;;  %v4168_v34 = vsub.f32 %v3900_v19, %v415_v2  ;;  %v563_v5 = vadd.f32 %v498_v13, %v497_v12 }
  0xf9   : > { %v4171_v6 = vsub.f32 %v3903_v20, %v416_v63  ;;  %v4174_v54 = vsub.f32 %v3906_v21, %v416_v63  ;;  %v314_v8 = vpop.xlane.xlu0 %313  ;;  %v566_v45 = vadd.f32 %v500_v15, %v499_v14 }
  0xfa   : > { %v401_v17 = vmul.f32 0.00390625, %v314_v8  ;;  %609 = vadd.xlane.f32.xlu1 %v608_v48  ;;  %564 = vadd.xlane.f32.xlu0 %v563_v5  ;;  %v317_v23 = vpop.xlane.xlu1 %316  ;;  %v529_v18 = vmul.f32 %v4165_v29, %v4165_v29  ;;  %v530_v19 = vmul.f32 %v4168_v34, %v4168_v34 }
  0xfb   : > { %v402_v2 = vmul.f32 0.00390625, %v317_v23  ;;  %v531_v20 = vmul.f32 %v4171_v6, %v4171_v6  ;;  %v532_v21 = vmul.f32 %v4174_v54, %v4174_v54 }
  0xfc   : > { %v4185_v12 = vsub.f32 %v3913_v24, %v401_v17  ;;  %v4188_v48 = vsub.f32 %v3916_v25, %v401_v17  ;;  %v611_v13 = vadd.f32 %v530_v19, %v529_v18  ;;  %v3350_v17 = vld [vmem:[#allocation5 + $0x1b4] ss:$24 sps:$4 sm:$0xff]   ;;  %v3352_v19 = vld [vmem:[#allocation5 + $0x1b0] ss:$24 sps:$4 sm:$0xff]  }
  0xfd   : > { %v4191_v63 = vsub.f32 %v3919_v26, %v402_v2  ;;  %v4194_v14 = vsub.f32 %v3922_v27, %v402_v2  ;;  %v362_v15 = vpop.xlane.xlu0 %361  ;;  %v614_v23 = vadd.f32 %v532_v21, %v531_v20  ;;  %1589 = vmatprep.subr.bf16.mxu0 %v3350_v17  ;;  %3235 = vmatprep.subr.bf16.mxu1 %v3350_v17 }
  0xfe   : > { %v417_v5 = vmul.f32 0.00390625, %v362_v15  ;;  %567 = vadd.xlane.f32.xlu1 %v566_v45  ;;  %612 = vadd.xlane.f32.xlu0 %v611_v13  ;;  %v365_v8 = vpop.xlane.xlu1 %364  ;;  %v501_v24 = vmul.f32 %v4185_v12, %v4185_v12  ;;  %v502_v25 = vmul.f32 %v4188_v48, %v4188_v48 }
  0xff   : > { %5093 = vst [vmem:[#allocation27_spill] sm:$0xff] %v4191_v63  ;;  %v418_v18 = vmul.f32 0.00390625, %v365_v8  ;;  %v503_v26 = vmul.f32 %v4191_v63, %v4191_v63  ;;  %v504_v27 = vmul.f32 %v4194_v14, %v4194_v14  ;;  %1590 = vmatpush1.bf16.msra.mxu0 %v3352_v19  ;;  %3251 = vmatpush1.bf16.msra.mxu1 %v3352_v19 }
 0x100   : > { %v4205_v45 = vsub.f32 %v3929_v30, %v417_v5  ;;  %v4208_v2 = vsub.f32 %v3932_v31, %v417_v5  ;;  %v569_v20 = vadd.f32 %v502_v25, %v501_v24  ;;  %v3353_v25 = vld [vmem:[#allocation5 + $0x1e4] ss:$24 sps:$4 sm:$0xff]  }
 0x101   : > { %v4211_v21 = vsub.f32 %v3935_v32, %v418_v18  ;;  %v4214_v13 = vsub.f32 %v3938_v33, %v418_v18  ;;  %v320_v15 = vpop.xlane.xlu0 %319  ;;  %v572_v63 = vadd.f32 %v504_v27, %v503_v26  ;;  %v3355_v26 = vld [vmem:[#allocation5 + $0x1e0] ss:$24 sps:$4 sm:$0xff]   ;;  %1591 = vmatprep.subr.bf16.mxu0 %v3353_v25  ;;  %3236 = vmatprep.subr.bf16.mxu1 %v3353_v25 }
 0x102   : > { %v403_v8 = vmul.f32 0.00390625, %v320_v15  ;;  %615 = vadd.xlane.f32.xlu1 %v614_v23  ;;  %570 = vadd.xlane.f32.xlu0 %v569_v20  ;;  %v323_v30 = vpop.xlane.xlu1 %322  ;;  %v533_v31 = vmul.f32 %v4205_v45, %v4205_v45  ;;  %v534_v5 = vmul.f32 %v4208_v2, %v4208_v2 }
 0x103   : > { %v404_v24 = vmul.f32 0.00390625, %v323_v30  ;;  %v535_v32 = vmul.f32 %v4211_v21, %v4211_v21  ;;  %v536_v33 = vmul.f32 %v4214_v13, %v4214_v13  ;;  %1592 = vmatpush1.bf16.msra.mxu0 %v3355_v26  ;;  %3252 = vmatpush1.bf16.msra.mxu1 %v3355_v26 }
 0x104   : > { %v4225_v17 = vsub.f32 %v3945_v36, %v403_v8  ;;  %v4228_v23 = vsub.f32 %v3948_v37, %v403_v8  ;;  %v617_v18 = vadd.f32 %v534_v5, %v533_v31  ;;  %v3356_v5 = vld [vmem:[#allocation5 + $0x214] ss:$24 sps:$4 sm:$0xff]  }
 0x105   : > { %v4231_v27 = vsub.f32 %v3951_v38, %v404_v24  ;;  %v4234_v19 = vsub.f32 %v3954_v39, %v404_v24  ;;  %v368_v20 = vpop.xlane.xlu0 %367  ;;  %v620_v36 = vadd.f32 %v536_v33, %v535_v32  ;;  %v3358_v33 = vld [vmem:[#allocation5 + $0x210] ss:$24 sps:$4 sm:$0xff]   ;;  %1593 = vmatprep.subr.bf16.mxu0 %v3356_v5  ;;  %3237 = vmatprep.subr.bf16.mxu1 %v3356_v5 }
 0x106   : > { %v419_v15 = vmul.f32 0.00390625, %v368_v20  ;;  %573 = vadd.xlane.f32.xlu1 %v572_v63  ;;  %618 = vadd.xlane.f32.xlu0 %v617_v18  ;;  %v371_v30 = vpop.xlane.xlu1 %370  ;;  %v505_v37 = vmul.f32 %v4225_v17, %v4225_v17  ;;  %v506_v8 = vmul.f32 %v4228_v23, %v4228_v23 }
 0x107   : > { %v420_v31 = vmul.f32 0.00390625, %v371_v30  ;;  %v507_v38 = vmul.f32 %v4231_v27, %v4231_v27  ;;  %v508_v39 = vmul.f32 %v4234_v19, %v4234_v19  ;;  %1594 = vmatpush1.bf16.msra.mxu0 %v3358_v33  ;;  %3253 = vmatpush1.bf16.msra.mxu1 %v3358_v33 }
 0x108   : > { %v4245_v63 = vsub.f32 %v3957_v40, %v419_v15  ;;  %v4248_v24 = vsub.f32 %v3960_v41, %v419_v15  ;;  %v575_v32 = vadd.f32 %v506_v8, %v505_v37  ;;  %v3359_v8 = vld [vmem:[#allocation5 + $0x244] ss:$24 sps:$4 sm:$0xff]  }
 0x109   : > { %v4251_v25 = vsub.f32 %v3965_v43, %v420_v31  ;;  %v4254_v18 = vsub.f32 %v3968_v44, %v420_v31  ;;  %v326_v20 = vpop.xlane.xlu0 %325  ;;  %v578_v40 = vadd.f32 %v508_v39, %v507_v38  ;;  %v3361_v39 = vld [vmem:[#allocation5 + $0x240] ss:$24 sps:$4 sm:$0xff]   ;;  %1595 = vmatprep.subr.bf16.mxu0 %v3359_v8  ;;  %3238 = vmatprep.subr.bf16.mxu1 %v3359_v8 }
 0x10a   : > { %v405_v30 = vmul.f32 0.00390625, %v326_v20  ;;  %621 = vadd.xlane.f32.xlu1 %v620_v36  ;;  %576 = vadd.xlane.f32.xlu0 %v575_v32  ;;  %v329_v26 = vpop.xlane.xlu1 %328  ;;  %v537_v41 = vmul.f32 %v4245_v63, %v4245_v63  ;;  %v538_v15 = vmul.f32 %v4248_v24, %v4248_v24 }
 0x10b   : > { %v406_v37 = vmul.f32 0.00390625, %v329_v26  ;;  %v539_v43 = vmul.f32 %v4251_v25, %v4251_v25  ;;  %v540_v44 = vmul.f32 %v4254_v18, %v4254_v18  ;;  %1596 = vmatpush1.bf16.msra.mxu0 %v3361_v39  ;;  %3254 = vmatpush1.bf16.msra.mxu1 %v3361_v39 }
 0x10c   : > { %v4265_v36 = vsub.f32 %v3973_v46, %v405_v30  ;;  %v4268_v31 = vsub.f32 %v3976_v47, %v405_v30  ;;  %v623_v38 = vadd.f32 %v538_v15, %v537_v41  ;;  %v3362_v15 = vld [vmem:[#allocation5 + $0x274] ss:$24 sps:$4 sm:$0xff]  }
 0x10d   : > { %v4271_v5 = vsub.f32 %v3981_v49, %v406_v37  ;;  %v4274_v32 = vsub.f32 %v3984_v50, %v406_v37  ;;  %v374_v20 = vpop.xlane.xlu0 %373  ;;  %v626_v46 = vadd.f32 %v540_v44, %v539_v43  ;;  %v3364_v44 = vld [vmem:[#allocation5 + $0x270] ss:$24 sps:$4 sm:$0xff]   ;;  %1597 = vmatprep.subr.bf16.mxu0 %v3362_v15  ;;  %3239 = vmatprep.subr.bf16.mxu1 %v3362_v15 }
 0x10e   : > { %v421_v26 = vmul.f32 0.00390625, %v374_v20  ;;  %579 = vadd.xlane.f32.xlu1 %v578_v40  ;;  %624 = vadd.xlane.f32.xlu0 %v623_v38  ;;  %v377_v33 = vpop.xlane.xlu1 %376  ;;  %v509_v47 = vmul.f32 %v4265_v36, %v4265_v36  ;;  %v510_v30 = vmul.f32 %v4268_v31, %v4268_v31 }
 0x10f   : > { %v422_v41 = vmul.f32 0.00390625, %v377_v33  ;;  %v511_v49 = vmul.f32 %v4271_v5, %v4271_v5  ;;  %v512_v50 = vmul.f32 %v4274_v32, %v4274_v32  ;;  %1598 = vmatpush1.bf16.msra.mxu0 %v3364_v44  ;;  %3255 = vmatpush1.bf16.msra.mxu1 %v3364_v44 }
 0x110   : > { %v4285_v40 = vsub.f32 %v3989_v52, %v421_v26  ;;  %v4288_v37 = vsub.f32 %v3992_v53, %v421_v26  ;;  %v581_v43 = vadd.f32 %v510_v30, %v509_v47  ;;  %v3365_v30 = vld [vmem:[#allocation5 + $0x2a4] ss:$24 sps:$4 sm:$0xff]  }
 0x111   : > { %v4291_v8 = vsub.f32 %v3997_v55, %v422_v41  ;;  %v4294_v38 = vsub.f32 %v4000_v56, %v422_v41  ;;  %v332_v20 = vpop.xlane.xlu0 %331  ;;  %v584_v52 = vadd.f32 %v512_v50, %v511_v49  ;;  %v3367_v50 = vld [vmem:[#allocation5 + $0x2a0] ss:$24 sps:$4 sm:$0xff]   ;;  %1599 = vmatprep.subr.bf16.mxu0 %v3365_v30  ;;  %3240 = vmatprep.subr.bf16.mxu1 %v3365_v30 }
 0x112   : > { %v407_v33 = vmul.f32 0.00390625, %v332_v20  ;;  %627 = vadd.xlane.f32.xlu1 %v626_v46  ;;  %582 = vadd.xlane.f32.xlu0 %v581_v43  ;;  %v335_v39 = vpop.xlane.xlu1 %334  ;;  %v541_v53 = vmul.f32 %v4285_v40, %v4285_v40  ;;  %v542_v26 = vmul.f32 %v4288_v37, %v4288_v37 }
 0x113   : > { %v408_v47 = vmul.f32 0.00390625, %v335_v39  ;;  %v543_v55 = vmul.f32 %v4291_v8, %v4291_v8  ;;  %v544_v56 = vmul.f32 %v4294_v38, %v4294_v38  ;;  %1600 = vmatpush1.bf16.msra.mxu0 %v3367_v50  ;;  %3256 = vmatpush1.bf16.msra.mxu1 %v3367_v50 }
 0x114   : > { %v4305_v46 = vsub.f32 %v4005_v58, %v407_v33  ;;  %v4308_v41 = vsub.f32 %v4008_v59, %v407_v33  ;;  %v629_v49 = vadd.f32 %v542_v26, %v541_v53  ;;  %v3368_v26 = vld [vmem:[#allocation5 + $0x2d4] ss:$24 sps:$4 sm:$0xff]  }
 0x115   : > { %v4311_v15 = vsub.f32 %v4013_v61, %v408_v47  ;;  %v4314_v43 = vsub.f32 %v4016_v62, %v408_v47  ;;  %v380_v20 = vpop.xlane.xlu0 %379  ;;  %v632_v58 = vadd.f32 %v544_v56, %v543_v55  ;;  %v3370_v56 = vld [vmem:[#allocation5 + $0x2d0] ss:$24 sps:$4 sm:$0xff]   ;;  %1601 = vmatprep.subr.bf16.mxu0 %v3368_v26  ;;  %3241 = vmatprep.subr.bf16.mxu1 %v3368_v26 }
 0x116   : > { %v423_v39 = vmul.f32 0.00390625, %v380_v20  ;;  %585 = vadd.xlane.f32.xlu1 %v584_v52  ;;  %630 = vadd.xlane.f32.xlu0 %v629_v49  ;;  %v383_v44 = vpop.xlane.xlu1 %382  ;;  %v513_v59 = vmul.f32 %v4305_v46, %v4305_v46  ;;  %v514_v33 = vmul.f32 %v4308_v41, %v4308_v41  ;;  %v5102_v26 = vld [vmem:[#allocation12_spill] sm:$0xff] }
 0x117   : > { %5094 = vst [vmem:[#allocation28_spill] sm:$0xff] %v4311_v15  ;;  %v424_v53 = vmul.f32 0.00390625, %v383_v44  ;;  %v515_v61 = vmul.f32 %v4311_v15, %v4311_v15  ;;  %v516_v62 = vmul.f32 %v4314_v43, %v4314_v43  ;;  %1602 = vmatpush1.bf16.msra.mxu0 %v3370_v56  ;;  %3257 = vmatpush1.bf16.msra.mxu1 %v3370_v56 }
 0x118   : > { %v4325_v52 = vsub.f32 %v4021_v3, %v423_v39  ;;  %v4328_v47 = vsub.f32 %v4024_v7, %v423_v39  ;;  %v587_v55 = vadd.f32 %v514_v33, %v513_v59  ;;  %v3373_v33 = vld [vmem:[#allocation5 + $0x14] ss:$24 sps:$4 sm:$0xff]  }
 0x119   : > { %v4331_v30 = vsub.f32 %v4029_v11, %v424_v53  ;;  %v4334_v49 = vsub.f32 %v4032_v16, %v424_v53  ;;  %v338_v20 = vpop.xlane.xlu0 %337  ;;  %v590_v3 = vadd.f32 %v516_v62, %v515_v61  ;;  %v5100_v53 = vld [vmem:[#allocation11_spill] sm:$0xff]  ;;  %1957 = vmatprep.subr.bf16.mxu0 %v3373_v33 }
 0x11a   : > { %5095 = vst [vmem:[#allocation29_spill] sm:$0xff] %v4325_v52  ;;  %5096 = vst [vmem:[#allocation30_spill] sm:$0xff] %v4328_v47  ;;  %v409_v44 = vmul.f32 0.00390625, %v338_v20  ;;  %633 = vadd.xlane.f32.xlu1 %v632_v58  ;;  %588 = vadd.xlane.f32.xlu0 %v587_v55  ;;  %v341_v50 = vpop.xlane.xlu1 %340  ;;  %v545_v7 = vmul.f32 %v4325_v52, %v4325_v52  ;;  %v546_v39 = vmul.f32 %v4328_v47, %v4328_v47  ;;  %v5104_v20 = vld [vmem:[#allocation13_spill] sm:$0xff] }
 0x11b   : > { %5097 = vst [vmem:[#allocation31_spill] sm:$0xff] %v4331_v30  ;;  %5098 = vst [vmem:[#allocation32_spill] sm:$0xff] %v4334_v49  ;;  %v410_v59 = vmul.f32 0.00390625, %v341_v50  ;;  %v547_v11 = vmul.f32 %v4331_v30, %v4331_v30  ;;  %v548_v16 = vmul.f32 %v4334_v49, %v4334_v49 }
 0x11c   : > { %v4345_v58 = vsub.f32 %v4037_v22, %v409_v44  ;;  %v4348_v61 = vsub.f32 %v5100_v53, %v409_v44  ;;  %v635_v62 = vadd.f32 %v546_v39, %v545_v7  ;;  %v3376_v53 = vld [vmem:[#allocation5 + $0xc] ss:$24 sps:$4 sm:$0xff]  }
 0x11d   : > { %v4351_v55 = vsub.f32 %v5102_v26, %v410_v59  ;;  %v4354_v50 = vsub.f32 %v5104_v20, %v410_v59  ;;  %v386_v30 = vpop.xlane.xlu0 %385  ;;  %v638_v49 = vadd.f32 %v548_v16, %v547_v11  ;;  %1764 = vmatprep.subr.bf16.mxu1 %v3376_v53 }
 0x11e   : > { %5099 = vst [vmem:[#allocation33_spill] sm:$0xff] %v4345_v58  ;;  %5101 = vst [vmem:[#allocation11_spill] sm:$0xff] %v4348_v61  ;;  %v425_v52 = vmul.f32 0.00390625, %v386_v30  ;;  %591 = vadd.xlane.f32.xlu1 %v590_v3  ;;  %636 = vadd.xlane.f32.xlu0 %v635_v62  ;;  %v389_v56 = vpop.xlane.xlu1 %388  ;;  %v517_v22 = vmul.f32 %v4345_v58, %v4345_v58  ;;  %v518_v44 = vmul.f32 %v4348_v61, %v4348_v61  ;;  %v5107_v3 = vld [vmem:[#allocation14_spill] sm:$0xff]  ;;  %v5110_v62 = vld [vmem:[#allocation15_spill] sm:$0xff] }
 0x11f   : > { %5103 = vst [vmem:[#allocation12_spill] sm:$0xff] %v4351_v55  ;;  %5105 = vst [vmem:[#allocation13_spill] sm:$0xff] %v4354_v50  ;;  %v426_v7 = vmul.f32 0.00390625, %v389_v56  ;;  %v519_v39 = vmul.f32 %v4351_v55, %v4351_v55  ;;  %v520_v59 = vmul.f32 %v4354_v50, %v4354_v50 }
 0x120   : > { %v4365_v30 = vsub.f32 %v4053_v42, %v425_v52  ;;  %v4368_v33 = vsub.f32 %v5107_v3, %v425_v52  ;;  %v593_v11 = vadd.f32 %v518_v44, %v517_v22 }
 0x121   : > { %v4371_v16 = vsub.f32 %v4061_v51, %v426_v7  ;;  %v4374_v26 = vsub.f32 %v5110_v62, %v426_v7  ;;  %v344_v20 = vpop.xlane.xlu0 %343  ;;  %v596_v58 = vadd.f32 %v520_v59, %v519_v39  ;;  %v5115_v59 = vld [vmem:[#allocation17_spill] sm:$0xff] }
 0x122   : > { %5106 = vst [vmem:[#allocation34_spill] sm:$0xff] %v4365_v30  ;;  %5108 = vst [vmem:[#allocation14_spill] sm:$0xff] %v4368_v33  ;;  %v411_v56 = vmul.f32 0.00390625, %v344_v20  ;;  %639 = vadd.xlane.f32.xlu1 %v638_v49  ;;  %594 = vadd.xlane.f32.xlu0 %v593_v11  ;;  %v347_v55 = vpop.xlane.xlu1 %346  ;;  %v549_v42 = vmul.f32 %v4365_v30, %v4365_v30  ;;  %v550_v52 = vmul.f32 %v4368_v33, %v4368_v33  ;;  %v5113_v49 = vld [vmem:[#allocation16_spill] sm:$0xff]  ;;  %v5117_v11 = vld [vmem:[#allocation18_spill] sm:$0xff] }
 0x123   : > { %5109 = vst [vmem:[#allocation35_spill] sm:$0xff] %v4371_v16  ;;  %5111 = vst [vmem:[#allocation15_spill] sm:$0xff] %v4374_v26  ;;  %v412_v22 = vmul.f32 0.00390625, %v347_v55  ;;  %v551_v51 = vmul.f32 %v4371_v16, %v4371_v16  ;;  %v552_v44 = vmul.f32 %v4374_v26, %v4374_v26 }
 0x124   : > { %v4385_v7 = vsub.f32 %v4069_v60, %v411_v56  ;;  %v4388_v53 = vsub.f32 %v5113_v49, %v411_v56  ;;  %v641_v39 = vadd.f32 %v550_v52, %v549_v42 }
 0x125   : > { %v4391_v3 = vsub.f32 %v5115_v59, %v412_v22  ;;  %v4394_v62 = vsub.f32 %v5117_v11, %v412_v22  ;;  %v392_v55 = vpop.xlane.xlu0 %391  ;;  %v644_v30 = vadd.f32 %v552_v44, %v551_v51  ;;  %v5119_v22 = vld [vmem:[#allocation19_spill] sm:$0xff]  ;;  %v5123_v44 = vld [vmem:[#allocation21_spill] sm:$0xff] }
 0x126   : > { %5112 = vst [vmem:[#allocation36_spill] sm:$0xff] %v4385_v7  ;;  %5114 = vst [vmem:[#allocation16_spill] sm:$0xff] %v4388_v53  ;;  %v427_v20 = vmul.f32 0.00390625, %v392_v55  ;;  %597 = vadd.xlane.f32.xlu1 %v596_v58  ;;  %642 = vadd.xlane.f32.xlu0 %v641_v39  ;;  %v395_v16 = vpop.xlane.xlu1 %394  ;;  %v521_v60 = vmul.f32 %v4385_v7, %v4385_v7  ;;  %v522_v56 = vmul.f32 %v4388_v53, %v4388_v53  ;;  %v5121_v58 = vld [vmem:[#allocation20_spill] sm:$0xff]  ;;  %v5125_v55 = vld [vmem:[#allocation22_spill] sm:$0xff] }
 0x127   : > { %5116 = vst [vmem:[#allocation17_spill] sm:$0xff] %v4391_v3  ;;  %5118 = vst [vmem:[#allocation18_spill] sm:$0xff] %v4394_v62  ;;  %v428_v49 = vmul.f32 0.00390625, %v395_v16  ;;  %v523_v42 = vmul.f32 %v4391_v3, %v4391_v3  ;;  %v524_v52 = vmul.f32 %v4394_v62, %v4394_v62 }
 0x128   : > { %v4405_v59 = vsub.f32 %v5119_v22, %v427_v20  ;;  %v4408_v39 = vsub.f32 %v5121_v58, %v427_v20  ;;  %v599_v51 = vadd.f32 %v522_v56, %v521_v60 }
 0x129   : > { %v4411_v11 = vsub.f32 %v5123_v44, %v428_v49  ;;  %v4414_v7 = vsub.f32 %v5125_v55, %v428_v49  ;;  %v602_v16 = vadd.f32 %v524_v52, %v523_v42  ;;  %v814_v42 = vlaneseq }
 0x12a   : > { %5120 = vst [vmem:[#allocation19_spill] sm:$0xff] %v4405_v59  ;;  %5122 = vst [vmem:[#allocation20_spill] sm:$0xff] %v4408_v39  ;;  %645 = vadd.xlane.f32.xlu1 %v644_v30  ;;  %600 = vadd.xlane.f32.xlu0 %v599_v51  ;;  %v553_v3 = vmul.f32 %v4405_v59, %v4405_v59  ;;  %v554_v22 = vmul.f32 %v4408_v39, %v4408_v39 }
 0x12b   : > { %5124 = vst [vmem:[#allocation21_spill] sm:$0xff] %v4411_v11  ;;  %5126 = vst [vmem:[#allocation22_spill] sm:$0xff] %v4414_v7  ;;  %v555_v20 = vmul.f32 %v4411_v11, %v4411_v11  ;;  %v556_v60 = vmul.f32 %v4414_v7, %v4414_v7  ;;  %v815_v39 = vshrl.u32 %v814_v42, 7 }
 0x12c   : > { %v647_v56 = vadd.f32 %v554_v22, %v553_v3 }
 0x12d   : > { %v650_v49 = vadd.f32 %v556_v60, %v555_v20  ;;  %v820_v22 = vsub.s32 1, %v815_v39  ;;  %v816_v20 = vsub.s32 0, %v815_v39 }
 0x12e   : > { %603 = vadd.xlane.f32.xlu1 %v602_v16  ;;  %648 = vadd.xlane.f32.xlu0 %v647_v56 }
 0x132   : > { %651 = vadd.xlane.f32.xlu1 %v650_v49  ;;  %v298_v49 = vld [vmem:[%s5019_s1] sm:$0x3] }
 0x17f   : > { %v559_v30 = vpop.xlane.xlu0 %558 }
 0x180   : > { %v653_v58 = vmul.f32 0.00390625, %v559_v30 }
 0x182   : > { %v685_v52 = vadd.f32 1e-05, %v653_v58 }
 0x183   : > { %v562_v51 = vpop.xlane.xlu1 %561  ;;  %v607_v44 = vpop.xlane.xlu0 %606 }
 0x184   : > { %3467 = vrsqrt.f32 %v685_v52  ;;  %v654_v55 = vmul.f32 0.00390625, %v562_v51  ;;  %v669_v59 = vmul.f32 0.00390625, %v607_v44 }
 0x186   : > { %v686_v62 = vadd.f32 1e-05, %v654_v55  ;;  %v701_v11 = vadd.f32 1e-05, %v669_v59  ;;  %v5127_v55 = vld [vmem:[#allocation24_spill] sm:$0xff] }
 0x187   : > { %v610_v53 = vpop.xlane.xlu1 %609  ;;  %v565_v26 = vpop.xlane.xlu0 %564 }
 0x188   : > { %3469 = vrsqrt.f32 %v686_v62  ;;  %v670_v3 = vmul.f32 0.00390625, %v610_v53  ;;  %v655_v16 = vmul.f32 0.00390625, %v565_v26  ;;  %v299_v62 = vld [vmem:[%s5020_s2] sm:$0x3]  ;;  %v4430_v53 = vrot.slane %v298_v49, %v820_v22 }
 0x189   : > { %3471 = vrsqrt.f32 %v701_v11  ;;  %v4432_v26 = vrot.slane %v298_v49, %v816_v20  ;;  %v4440_v50 = vrot.slane %v299_v62, %v816_v20 }
 0x18a   : > { %v702_v60 = vadd.f32 1e-05, %v670_v3  ;;  %v687_v56 = vadd.f32 1e-05, %v655_v16  ;;  %v4435_v16 = vrot.slane %v299_v62, %v820_v22 }
 0x18b   : > { %v568_v30 = vpop.xlane.xlu1 %567  ;;  %v613_v58 = vpop.xlane.xlu0 %612 }
 0x18c   : > { %3473 = vrsqrt.f32 %v702_v60  ;;  %v656_v42 = vmul.f32 0.00390625, %v568_v30  ;;  %v671_v52 = vmul.f32 0.00390625, %v613_v58  ;;  %v5128_v60 = vld [vmem:[#allocation23_spill] sm:$0xff] }
 0x18d   : > { %3475 = vrsqrt.f32 %v687_v56 }
 0x18e   : > { %v3468_v59 = vpop.eup %3467  ;;  %v688_v39 = vadd.f32 1e-05, %v656_v42  ;;  %v703_v11 = vadd.f32 1e-05, %v671_v52 }
 0x18f   : > { %v616_v51 = vpop.xlane.xlu1 %615  ;;  %v571_v44 = vpop.xlane.xlu0 %570  ;;  %v750_v3 = vmul.f32 %v3468_v59, %v5127_v55  ;;  %v749_v30 = vmul.f32 %v3468_v59, %v5128_v60 }
 0x190   : > { %3477 = vrsqrt.f32 %v688_v39  ;;  %v672_v58 = vmul.f32 0.00390625, %v616_v51  ;;  %v657_v7 = vmul.f32 0.00390625, %v571_v44 }
 0x191   : > { %v825_v33 = vmul.f32 %v4430_v53, %v750_v3  ;;  %v824_v49 = vmul.f32 %v4432_v26, %v749_v30  ;;  %3479 = vrsqrt.f32 %v703_v11  ;;  %v5129_v3 = vld [vmem:[#allocation26_spill] sm:$0xff] }
 0x192   : > { %v3470_v56 = vpop.eup %3469  ;;  %v704_v42 = vadd.f32 1e-05, %v672_v58  ;;  %v689_v52 = vadd.f32 1e-05, %v657_v7 }
 0x193   : > { %v3472_v61 = vpop.eup %3471  ;;  %v574_v47 = vpop.xlane.xlu1 %573  ;;  %v752_v22 = vmul.f32 %v3470_v56, %v4128_v4  ;;  %v900_v59 = vadd.f32 %v4435_v16, %v825_v33  ;;  %v751_v39 = vmul.f32 %v3470_v56, %v4125_v35  ;;  %v899_v7 = vadd.f32 %v4440_v50, %v824_v49  ;;  %v5130_v33 = vld [vmem:[#allocation25_spill] sm:$0xff] }
 0x194   : > { %v619_v55 = vpop.xlane.xlu0 %618  ;;  %3481 = vrsqrt.f32 %v704_v42  ;;  %v658_v51 = vmul.f32 0.00390625, %v574_v47  ;;  %v782_v60 = vmul.f32 %v3472_v61, %v5129_v3  ;;  %v781_v15 = vmul.f32 %v3472_v61, %v5130_v33  ;;  %v3371_v3 = vld [vmem:[#allocation5 + $0x10] ss:$24 sps:$4 sm:$0xff]  }
 0x195   : > { %v673_v44 = vmul.f32 0.00390625, %v619_v55  ;;  %3483 = vrsqrt.f32 %v689_v52  ;;  %v827_v20 = vmul.f32 %v4430_v53, %v752_v22  ;;  %v826_v62 = vmul.f32 %v4432_v26, %v751_v39 }
 0x196   : > { %v3474_v11 = vpop.eup %3473  ;;  %v690_v30 = vadd.f32 1e-05, %v658_v51  ;;  %v857_v4 = vmul.f32 %v4430_v53, %v782_v60 }
 0x197   : > { %v705_v58 = vadd.f32 1e-05, %v673_v44  ;;  %v622_v35 = vpop.xlane.xlu1 %621  ;;  %v902_v47 = vadd.f32 %v4435_v16, %v827_v20  ;;  %v901_v42 = vadd.f32 %v4440_v50, %v826_v62  ;;  %v784_v52 = vmul.f32 %v3474_v11, %v4134_v28  ;;  %v3476_v22 = vpop.eup %3475 }
 0x198   : > { %v577_v56 = vpop.xlane.xlu0 %576  ;;  %v783_v55 = vmul.f32 %v3474_v11, %v4131_v57  ;;  %3485 = vrsqrt.f32 %v690_v30  ;;  %v674_v49 = vmul.f32 0.00390625, %v622_v35  ;;  %v932_v51 = vadd.f32 %v4435_v16, %v857_v4  ;;  %v3379_v11 = vld [vmem:[#allocation5 + $0x44] ss:$24 sps:$4 sm:$0xff]  }
 0x199   : > { %v659_v39 = vmul.f32 0.00390625, %v577_v56  ;;  %3487 = vrsqrt.f32 %v705_v58  ;;  %v4456_v44 = vpack.c.bf16 %v902_v47, %v900_v59  ;;  %v4458_v61 = vpack.c.bf16 %v901_v42, %v899_v7 }
 0x19a   : > { %v859_v60 = vmul.f32 %v4430_v53, %v784_v52  ;;  %v3478_v20 = vpop.eup %3477  ;;  %v706_v62 = vadd.f32 1e-05, %v674_v49  ;;  %v856_v28 = vmul.f32 %v4432_v26, %v781_v15  ;;  %v858_v57 = vmul.f32 %v4432_v26, %v783_v55  ;;  %v3377_v49 = vld [vmem:[#allocation5 + $0x40] ss:$24 sps:$4 sm:$0xff]  }
 0x19b   : > { %v691_v33 = vadd.f32 1e-05, %v659_v39  ;;  %v580_v30 = vpop.xlane.xlu1 %579  ;;  %1603 = vmatprep.mubr.bf16.mxu0 %v4456_v44  ;;  %v754_v7 = vmul.f32 %v3476_v22, %v4148_v10  ;;  %v756_v58 = vmul.f32 %v3478_v20, %v4154_v1  ;;  %v753_v35 = vmul.f32 %v3476_v22, %v4145_v9  ;;  %v3480_v56 = vpop.eup %3479  ;;  %v3374_v9 = vld [vmem:[#allocation5 + $0x8] ss:$24 sps:$4 sm:$0xff]  }
 0x19c   : > { %v625_v4 = vpop.xlane.xlu0 %624  ;;  %v934_v59 = vadd.f32 %v4435_v16, %v859_v60  ;;  %3489 = vrsqrt.f32 %v706_v62  ;;  %v660_v47 = vmul.f32 0.00390625, %v580_v30  ;;  %1604 = vmatmul.mubr.bf16.vlgmr.msra.gmra.mrb[0].mxu0 %v4458_v61  ;;  %v931_v52 = vadd.f32 %v4440_v50, %v856_v28  ;;  %v3385_v62 = vld [vmem:[#allocation5 + $0x74] ss:$24 sps:$4 sm:$0xff]  }
 0x19d   : > { %v675_v42 = vmul.f32 0.00390625, %v625_v4  ;;  %1958 = vmatpush1.bf16.msra.mxu0 %v3371_v3  ;;  %v933_v55 = vadd.f32 %v4440_v50, %v858_v57  ;;  %v829_v10 = vmul.f32 %v4430_v53, %v754_v7  ;;  %3491 = vrsqrt.f32 %v691_v33  ;;  %v3382_v4 = vld [vmem:[#allocation5 + $0x3c] ss:$24 sps:$4 sm:$0xff]  }
 0x19e   : > { %v4469_v15 = vpack.c.bf16 %v934_v59, %v932_v51  ;;  %v3482_v39 = vpop.eup %3481  ;;  %v692_v1 = vadd.f32 1e-05, %v660_v47  ;;  %1959 = vmatprep.subr.bf16.mxu0 %v3379_v11  ;;  %v831_v22 = vmul.f32 %v4430_v53, %v756_v58  ;;  %v755_v60 = vmul.f32 %v3478_v20, %v4151_v0  ;;  %v3380_v20 = vld [vmem:[#allocation5 + $0x38] ss:$24 sps:$4 sm:$0xff]  }
 0x19f   : > { %v4476_v3 = vpop.eup %3483  ;;  %v707_v51 = vadd.f32 1e-05, %v675_v42  ;;  %v628_v30 = vpop.xlane.xlu1 %627  ;;  %v4479_v57 = vpack.c.bf16 %v933_v55, %v931_v52  ;;  %v828_v33 = vmul.f32 %v4432_v26, %v753_v35  ;;  %v786_v59 = vmul.f32 %v3480_v56, %v4168_v34  ;;  %v3383_v52 = vld [vmem:[#allocation5 + $0x70] ss:$24 sps:$4 sm:$0xff]  }
 0x1a0   : > { %1683 = vmatprep.mubr.bf16.mxu1 %v4469_v15  ;;  %v583_v28 = vpop.xlane.xlu0 %582  ;;  %v676_v11 = vmul.f32 0.00390625, %v628_v30  ;;  %v904_v58 = vadd.f32 %v4435_v16, %v829_v10  ;;  %v906_v0 = vadd.f32 %v4435_v16, %v831_v22  ;;  %3493 = vrsqrt.f32 %v692_v1  ;;  %v3391_v1 = vld [vmem:[#allocation5 + $0xa4] ss:$24 sps:$4 sm:$0xff]  }
 0x1a1   : > { %5131 = vst [vmem:[#allocation24_spill] sm:$0xff] %v4479_v57  ;;  %v661_v7 = vmul.f32 0.00390625, %v583_v28  ;;  %1684 = vmatmul.mubr.bf16.vlgmr.msra.gmra.mrb[0].mxu1 %v4479_v57  ;;  %1960 = vmatpush1.bf16.msra.mxu0 %v3377_v49  ;;  %v830_v47 = vmul.f32 %v4432_v26, %v755_v60  ;;  %v903_v42 = vadd.f32 %v4440_v50, %v828_v33  ;;  %3495 = vrsqrt.f32 %v707_v51  ;;  %v3397_v51 = vld [vmem:[#allocation5 + $0xd4] ss:$24 sps:$4 sm:$0xff]  }
 0x1a2   : > { %v788_v35 = vmul.f32 %v3482_v39, %v4174_v54  ;;  %v3486_v55 = vpop.eup %3485  ;;  %v708_v34 = vadd.f32 1e-05, %v676_v11  ;;  %1765 = vmatpush1.bf16.msra.mxu1 %v3374_v9  ;;  %v4489_v28 = vpack.c.bf16 %v906_v0, %v904_v58  ;;  %1961 = vmatprep.subr.bf16.mxu0 %v3385_v62  ;;  %v861_v10 = vmul.f32 %v4430_v53, %v786_v59  ;;  %v3388_v54 = vld [vmem:[#allocation5 + $0x6c] ss:$24 sps:$4 sm:$0xff]  }
 0x1a3   : > { %v693_v30 = vadd.f32 1e-05, %v661_v7  ;;  %v4492_v22 = vpop.eup %3487  ;;  %v586_v49 = vpop.xlane.xlu1 %585  ;;  %1766 = vmatprep.subr.bf16.mxu1 %v3382_v4  ;;  %v905_v33 = vadd.f32 %v4440_v50, %v830_v47  ;;  %v785_v11 = vmul.f32 %v3480_v56, %v4165_v29  ;;  %v787_v9 = vmul.f32 %v3482_v39, %v4171_v6  ;;  %v3389_v47 = vld [vmem:[#allocation5 + $0xa0] ss:$24 sps:$4 sm:$0xff]  }
 0x1a4   : > { %v631_v60 = vpop.xlane.xlu0 %630  ;;  %v863_v57 = vmul.f32 %v4430_v53, %v788_v35  ;;  %v662_v7 = vmul.f32 0.00390625, %v586_v49  ;;  %1613 = vmatprep.mubr.bf16.mxu0 %v4489_v28  ;;  %v936_v4 = vadd.f32 %v4435_v16, %v861_v10  ;;  %3497 = vrsqrt.f32 %v708_v34  ;;  %v3386_v6 = vld [vmem:[#allocation5 + $0x68] ss:$24 sps:$4 sm:$0xff]  }
 0x1a5   : > { %v677_v62 = vmul.f32 0.00390625, %v631_v60  ;;  %v4499_v59 = vpack.c.bf16 %v905_v33, %v903_v42  ;;  %1962 = vmatpush1.bf16.msra.mxu0 %v3383_v52  ;;  %v860_v0 = vmul.f32 %v4432_v26, %v785_v11  ;;  %v862_v56 = vmul.f32 %v4432_v26, %v787_v9  ;;  %v3392_v11 = vld [vmem:[#allocation5 + $0x98] ss:$24 sps:$4 sm:$0xff]  }
 0x1a6   : > { %v938_v58 = vadd.f32 %v4435_v16, %v863_v57  ;;  %v4504_v35 = vpop.eup %3489  ;;  %v694_v29 = vadd.f32 1e-05, %v662_v7  ;;  %1767 = vmatpush1.bf16.msra.mxu1 %v3380_v20  ;;  %1963 = vmatprep.subr.bf16.mxu0 %v3391_v1  ;;  %v758_v39 = vmul.f32 %v4476_v3, %v4188_v48  ;;  %3499 = vrsqrt.f32 %v693_v30  ;;  %v3394_v20 = vld [vmem:[#allocation5 + $0x9c] ss:$24 sps:$4 sm:$0xff]   ;;  %v3395_v9 = vld [vmem:[#allocation5 + $0xd0] ss:$24 sps:$4 sm:$0xff]  }
 0x1a7   : > { %v709_v42 = vadd.f32 1e-05, %v677_v62  ;;  %1614 = vmatmul.mubr.bf16.gmra.mrb[4].mxu0 %v4499_v59  ;;  %v634_v57 = vpop.xlane.xlu1 %633  ;;  %1768 = vmatprep.subr.bf16.mxu1 %v3388_v54  ;;  %v760_v34 = vmul.f32 %v3486_v55, %v4194_v14  ;;  %v4513_v49 = vpop.eup %3491  ;;  %v935_v33 = vadd.f32 %v4440_v50, %v860_v0  ;;  %v937_v48 = vadd.f32 %v4440_v50, %v862_v56 }
 0x1a8   : > { %v4510_v52 = vpack.c.bf16 %v938_v58, %v936_v4  ;;  %v589_v10 = vpop.xlane.xlu0 %588  ;;  %v678_v60 = vmul.f32 0.00390625, %v634_v57  ;;  %3501 = vrsqrt.f32 %v694_v29  ;;  %v833_v30 = vmul.f32 %v4430_v53, %v758_v39  ;;  %v5132_v58 = vld [vmem:[#allocation27_spill] sm:$0xff] }
 0x1a9   : > { %v663_v1 = vmul.f32 0.00390625, %v589_v10  ;;  %1964 = vmatpush1.bf16.msra.mxu0 %v3389_v47  ;;  %v835_v54 = vmul.f32 %v4430_v53, %v760_v34  ;;  %v757_v14 = vmul.f32 %v4476_v3, %v4185_v12  ;;  %v4522_v4 = vpack.c.bf16 %v937_v48, %v935_v33  ;;  %v3403_v29 = vld [vmem:[#allocation5 + $0x104] ss:$24 sps:$4 sm:$0xff]   ;;  %v3401_v33 = vld [vmem:[#allocation5 + $0x100] ss:$24 sps:$4 sm:$0xff]  }
 0x1aa   : > { %1693 = vmatprep.mubr.bf16.mxu1 %v4510_v52  ;;  %v710_v7 = vadd.f32 1e-05, %v678_v60  ;;  %1769 = vmatpush1.bf16.msra.mxu1 %v3386_v6  ;;  %v759_v0 = vmul.f32 %v3486_v55, %v5132_v58  ;;  %v4525_v56 = vpop.eup %3493  ;;  %v908_v39 = vadd.f32 %v4435_v16, %v833_v30  ;;  %v790_v3 = vmul.f32 %v4492_v22, %v4208_v2  ;;  %v3400_v34 = vld [vmem:[#allocation5 + $0xcc] ss:$24 sps:$4 sm:$0xff]  }
 0x1ab   : > { %v695_v62 = vadd.f32 1e-05, %v663_v1  ;;  %1965 = vmatprep.subr.bf16.mxu0 %v3397_v51  ;;  %v592_v47 = vpop.xlane.xlu1 %591  ;;  %v910_v57 = vadd.f32 %v4435_v16, %v835_v54  ;;  %1770 = vmatprep.subr.bf16.mxu1 %v3394_v20  ;;  %v832_v12 = vmul.f32 %v4432_v26, %v757_v14  ;;  %3503 = vrsqrt.f32 %v709_v42  ;;  %v4539_v48 = vpop.eup %3495  ;;  %v3398_v14 = vld [vmem:[#allocation5 + $0xc8] ss:$24 sps:$4 sm:$0xff]  }
 0x1ac   : > { %v637_v10 = vpop.xlane.xlu0 %636  ;;  %1694 = vmatmul.mubr.bf16.gmra.mrb[4].mxu1 %v4522_v4  ;;  %v664_v55 = vmul.f32 0.00390625, %v592_v47  ;;  %v834_v51 = vmul.f32 %v4432_v26, %v759_v0  ;;  %3505 = vrsqrt.f32 %v710_v7  ;;  %v792_v20 = vmul.f32 %v4504_v35, %v4214_v13  ;;  %v3406_v47 = vld [vmem:[#allocation5 + $0xfc] ss:$24 sps:$4 sm:$0xff]  }
 0x1ad   : > { %v679_v6 = vmul.f32 0.00390625, %v637_v10  ;;  %v4534_v60 = vpack.c.bf16 %v910_v57, %v908_v39  ;;  %v907_v1 = vadd.f32 %v4440_v50, %v832_v12  ;;  %1966 = vmatpush1.bf16.msra.mxu0 %v3395_v9  ;;  %v865_v54 = vmul.f32 %v4430_v53, %v790_v3 }
 0x1ae   : > { %v696_v2 = vadd.f32 1e-05, %v664_v55  ;;  %v909_v30 = vadd.f32 %v4440_v50, %v834_v51  ;;  %1771 = vmatpush1.bf16.msra.mxu1 %v3392_v11  ;;  %1967 = vmatprep.subr.bf16.mxu0 %v3403_v29  ;;  %3507 = vrsqrt.f32 %v695_v62  ;;  %v867_v9 = vmul.f32 %v4430_v53, %v792_v20  ;;  %v3409_v11 = vld [vmem:[#allocation5 + $0x134] ss:$24 sps:$4 sm:$0xff]   ;;  %v4549_v39 = vpop.eup %3497  ;;  %v3415_v51 = vld [vmem:[#allocation5 + $0x164] ss:$24 sps:$4 sm:$0xff]  }
 0x1af   : > { %v711_v42 = vadd.f32 1e-05, %v679_v6  ;;  %1623 = vmatprep.mubr.bf16.mxu0 %v4534_v60  ;;  %v640_v7 = vpop.xlane.xlu1 %639  ;;  %1772 = vmatprep.subr.bf16.mxu1 %v3400_v34  ;;  %v789_v58 = vmul.f32 %v4492_v22, %v4205_v45  ;;  %v791_v0 = vmul.f32 %v4504_v35, %v4211_v21  ;;  %v940_v57 = vadd.f32 %v4435_v16, %v865_v54  ;;  %v3407_v21 = vld [vmem:[#allocation5 + $0x130] ss:$24 sps:$4 sm:$0xff]  }
 0x1b0   : > { %v595_v13 = vpop.xlane.xlu0 %594  ;;  %3509 = vrsqrt.f32 %v696_v2  ;;  %v4551_v29 = vpack.c.bf16 %v909_v30, %v907_v1  ;;  %v680_v62 = vmul.f32 0.00390625, %v640_v7  ;;  %v4554_v10 = vpop.eup %3499  ;;  %v942_v12 = vadd.f32 %v4435_v16, %v867_v9  ;;  %v3404_v6 = vld [vmem:[#allocation5 + $0xf8] ss:$24 sps:$4 sm:$0xff]  }
 0x1b1   : > { %3511 = vrsqrt.f32 %v711_v42  ;;  %v665_v3 = vmul.f32 0.00390625, %v595_v13  ;;  %v864_v45 = vmul.f32 %v4432_v26, %v789_v58  ;;  %1968 = vmatpush1.bf16.msra.mxu0 %v3401_v33  ;;  %v866_v35 = vmul.f32 %v4432_v26, %v791_v0  ;;  %v3413_v0 = vld [vmem:[#allocation5 + $0x160] ss:$24 sps:$4 sm:$0xff]  }
 0x1b2   : > { %1624 = vmatmul.mubr.bf16.gmra.mrb[8].mxu0 %v4551_v29  ;;  %v712_v22 = vadd.f32 1e-05, %v680_v62  ;;  %1773 = vmatpush1.bf16.msra.mxu1 %v3398_v14  ;;  %v762_v34 = vmul.f32 %v4513_v49, %v4228_v23  ;;  %v764_v55 = vmul.f32 %v4525_v56, %v4234_v19  ;;  %v4564_v1 = vpop.eup %3501  ;;  %v4566_v20 = vpack.c.bf16 %v942_v12, %v940_v57  ;;  %v3412_v23 = vld [vmem:[#allocation5 + $0x12c] ss:$24 sps:$4 sm:$0xff]   ;;  %v3410_v57 = vld [vmem:[#allocation5 + $0x128] ss:$24 sps:$4 sm:$0xff]  }
 0x1b3   : > { %v697_v33 = vadd.f32 1e-05, %v665_v3  ;;  %v939_v2 = vadd.f32 %v4440_v50, %v864_v45  ;;  %v598_v42 = vpop.xlane.xlu1 %597  ;;  %1774 = vmatprep.subr.bf16.mxu1 %v3406_v47  ;;  %v761_v54 = vmul.f32 %v4513_v49, %v4225_v17  ;;  %1969 = vmatprep.subr.bf16.mxu0 %v3409_v11  ;;  %v941_v19 = vadd.f32 %v4440_v50, %v866_v35  ;;  %v3421_v12 = vld [vmem:[#allocation5 + $0x194] ss:$24 sps:$4 sm:$0xff]  }
 0x1b4   : > { %v643_v30 = vpop.xlane.xlu0 %642  ;;  %3513 = vrsqrt.f32 %v712_v22  ;;  %v666_v14 = vmul.f32 0.00390625, %v598_v42  ;;  %v837_v7 = vmul.f32 %v4430_v53, %v762_v34  ;;  %1703 = vmatprep.mubr.bf16.mxu1 %v4566_v20  ;;  %v839_v9 = vmul.f32 %v4430_v53, %v764_v55 }
 0x1b5   : > { %3515 = vrsqrt.f32 %v697_v33  ;;  %v681_v13 = vmul.f32 0.00390625, %v643_v30  ;;  %v763_v58 = vmul.f32 %v4525_v56, %v4231_v27  ;;  %1970 = vmatpush1.bf16.msra.mxu0 %v3407_v21  ;;  %v4577_v17 = vpop.eup %3503  ;;  %v4579_v49 = vpack.c.bf16 %v941_v19, %v939_v2  ;;  %v3416_v30 = vld [vmem:[#allocation5 + $0x158] ss:$24 sps:$4 sm:$0xff]  }
 0x1b6   : > { %v698_v47 = vadd.f32 1e-05, %v666_v14  ;;  %v912_v11 = vadd.f32 %v4435_v16, %v837_v7  ;;  %v836_v62 = vmul.f32 %v4432_v26, %v761_v54  ;;  %1775 = vmatpush1.bf16.msra.mxu1 %v3404_v6  ;;  %1971 = vmatprep.subr.bf16.mxu0 %v3415_v51  ;;  %v4583_v3 = vpop.eup %3505  ;;  %v914_v45 = vadd.f32 %v4435_v16, %v839_v9  ;;  %v3418_v51 = vld [vmem:[#allocation5 + $0x15c] ss:$24 sps:$4 sm:$0xff]   ;;  %v3419_v7 = vld [vmem:[#allocation5 + $0x190] ss:$24 sps:$4 sm:$0xff]  }
 0x1b7   : > { %v713_v27 = vadd.f32 1e-05, %v681_v13  ;;  %v838_v56 = vmul.f32 %v4432_v26, %v763_v58  ;;  %v646_v21 = vpop.xlane.xlu1 %645  ;;  %v794_v22 = vmul.f32 %v4539_v48, %v4248_v24  ;;  %1776 = vmatprep.subr.bf16.mxu1 %v3412_v23  ;;  %1704 = vmatmul.mubr.bf16.gmra.mrb[8].mxu1 %v4579_v49  ;;  %v796_v6 = vmul.f32 %v4549_v39, %v4254_v18 }
 0x1b8   : > { %v601_v35 = vpop.xlane.xlu0 %600  ;;  %3517 = vrsqrt.f32 %v698_v47  ;;  %v911_v34 = vadd.f32 %v4440_v50, %v836_v62  ;;  %v682_v55 = vmul.f32 0.00390625, %v646_v21  ;;  %v4593_v33 = vpop.eup %3507  ;;  %v4595_v2 = vpack.c.bf16 %v914_v45, %v912_v11 }
 0x1b9   : > { %3519 = vrsqrt.f32 %v713_v27  ;;  %v913_v42 = vadd.f32 %v4440_v50, %v838_v56  ;;  %v869_v24 = vmul.f32 %v4430_v53, %v794_v22  ;;  %1972 = vmatpush1.bf16.msra.mxu0 %v3413_v0  ;;  %v871_v19 = vmul.f32 %v4430_v53, %v796_v6 }
 0x1ba   : > { %v4599_v54 = vpop.eup %3509  ;;  %v714_v23 = vadd.f32 1e-05, %v682_v55  ;;  %v667_v14 = vmul.f32 0.00390625, %v601_v35  ;;  %v793_v18 = vmul.f32 %v4539_v48, %v4245_v63  ;;  %1777 = vmatpush1.bf16.msra.mxu1 %v3410_v57  ;;  %1973 = vmatprep.subr.bf16.mxu0 %v3421_v12  ;;  %v795_v0 = vmul.f32 %v4549_v39, %v4251_v25  ;;  %v3424_v63 = vld [vmem:[#allocation5 + $0x18c] ss:$24 sps:$4 sm:$0xff]  }
 0x1bb   : > { %v4604_v9 = vpop.eup %3511  ;;  %1633 = vmatprep.mubr.bf16.mxu0 %v4595_v2  ;;  %v4607_v13 = vpack.c.bf16 %v913_v42, %v911_v34  ;;  %v944_v58 = vadd.f32 %v4435_v16, %v869_v24  ;;  %v604_v47 = vpop.xlane.xlu1 %603  ;;  %v766_v11 = vmul.f32 %v4554_v10, %v4268_v31  ;;  %v3427_v48 = vld [vmem:[#allocation5 + $0x1c4] ss:$24 sps:$4 sm:$0xff]   ;;  %v946_v57 = vadd.f32 %v4435_v16, %v871_v19  ;;  %v3422_v34 = vld [vmem:[#allocation5 + $0x188] ss:$24 sps:$4 sm:$0xff]  }
 0x1bc   : > { %v649_v62 = vpop.xlane.xlu0 %648  ;;  %3521 = vrsqrt.f32 %v714_v23  ;;  %v699_v12 = vadd.f32 1e-05, %v667_v14  ;;  %v868_v45 = vmul.f32 %v4432_v26, %v793_v18  ;;  %1778 = vmatprep.subr.bf16.mxu1 %v3418_v51  ;;  %v870_v27 = vmul.f32 %v4432_v26, %v795_v0  ;;  %v3425_v55 = vld [vmem:[#allocation5 + $0x1c0] ss:$24 sps:$4 sm:$0xff]   ;;  %v3430_v19 = vld [vmem:[#allocation5 + $0x1bc] ss:$24 sps:$4 sm:$0xff]  }
 0x1bd   : > { %1634 = vmatmul.mubr.bf16.gmra.mrb[12].mxu0 %v4607_v13  ;;  %v668_v56 = vmul.f32 0.00390625, %v604_v47  ;;  %v768_v25 = vmul.f32 %v4564_v1, %v4274_v32  ;;  %v841_v31 = vmul.f32 %v4430_v53, %v766_v11  ;;  %v4623_v21 = vpack.c.bf16 %v946_v57, %v944_v58  ;;  %v3433_v58 = vld [vmem:[#allocation5 + $0x1f4] ss:$24 sps:$4 sm:$0xff]  }
 0x1be   : > { %v4621_v39 = vpop.eup %3513  ;;  %3523 = vrsqrt.f32 %v699_v12  ;;  %v943_v22 = vadd.f32 %v4440_v50, %v868_v45  ;;  %v683_v35 = vmul.f32 0.00390625, %v649_v62  ;;  %1779 = vmatpush1.bf16.msra.mxu1 %v3416_v30  ;;  %1974 = vmatpush1.bf16.msra.mxu0 %v3419_v7  ;;  %v945_v51 = vadd.f32 %v4440_v50, %v870_v27  ;;  %v3431_v12 = vld [vmem:[#allocation5 + $0x1f0] ss:$24 sps:$4 sm:$0xff]  }
 0x1bf   : > { %v4626_v6 = vpop.eup %3515  ;;  %v700_v42 = vadd.f32 1e-05, %v668_v56  ;;  %v843_v32 = vmul.f32 %v4430_v53, %v768_v25  ;;  %v916_v24 = vadd.f32 %v4435_v16, %v841_v31  ;;  %v652_v23 = vpop.xlane.xlu1 %651  ;;  %1780 = vmatprep.subr.bf16.mxu1 %v3424_v63  ;;  %1975 = vmatprep.subr.bf16.mxu0 %v3427_v48  ;;  %v765_v30 = vmul.f32 %v4554_v10, %v4265_v36 }
 0x1c0   : > { %1713 = vmatprep.mubr.bf16.mxu1 %v4623_v21  ;;  %v715_v14 = vadd.f32 1e-05, %v683_v35  ;;  %v767_v18 = vmul.f32 %v4564_v1, %v4271_v5  ;;  %v684_v7 = vmul.f32 0.00390625, %v652_v23  ;;  %v4636_v0 = vpack.c.bf16 %v945_v51, %v943_v22  ;;  %v3428_v5 = vld [vmem:[#allocation5 + $0x1b8] ss:$24 sps:$4 sm:$0xff]  }
 0x1c1   : > { %3525 = vrsqrt.f32 %v700_v42  ;;  %v918_v47 = vadd.f32 %v4435_v16, %v843_v32  ;;  %v798_v11 = vmul.f32 %v4577_v17, %v4288_v37  ;;  %v840_v63 = vmul.f32 %v4432_v26, %v765_v30  ;;  %v3434_v51 = vld [vmem:[#allocation5 + $0x1e8] ss:$24 sps:$4 sm:$0xff]  }
 0x1c2   : > { %v4641_v62 = vpop.eup %3517  ;;  %3527 = vrsqrt.f32 %v715_v14  ;;  %v842_v36 = vmul.f32 %v4432_v26, %v767_v18  ;;  %1781 = vmatpush1.bf16.msra.mxu1 %v3422_v34  ;;  %1976 = vmatpush1.bf16.msra.mxu0 %v3425_v55  ;;  %v800_v48 = vmul.f32 %v4583_v3, %v4294_v38  ;;  %v797_v57 = vmul.f32 %v4577_v17, %v4285_v40  ;;  %v3436_v17 = vld [vmem:[#allocation5 + $0x1ec] ss:$24 sps:$4 sm:$0xff]   ;;  %v5134_v14 = vld [vmem:[#allocation30_spill] sm:$0xff] }
 0x1c3   : > { %v4645_v10 = vpop.eup %3519  ;;  %1714 = vmatmul.mubr.bf16.gmra.mrb[12].mxu1 %v4636_v0  ;;  %v4648_v1 = vpack.c.bf16 %v918_v47, %v916_v24  ;;  %v873_v37 = vmul.f32 %v4430_v53, %v798_v11  ;;  %v915_v45 = vadd.f32 %v4440_v50, %v840_v63  ;;  %v716_v56 = vadd.f32 1e-05, %v684_v7  ;;  %1782 = vmatprep.subr.bf16.mxu1 %v3430_v19  ;;  %v5133_v24 = vld [vmem:[#allocation28_spill] sm:$0xff]  ;;  %v3439_v18 = vld [vmem:[#allocation5 + $0x224] ss:$24 sps:$4 sm:$0xff]  }
 0x1c4   : > { %v917_v27 = vadd.f32 %v4440_v50, %v842_v36  ;;  %v799_v25 = vmul.f32 %v4583_v3, %v4291_v8  ;;  %1977 = vmatprep.subr.bf16.mxu0 %v3433_v58  ;;  %v875_v38 = vmul.f32 %v4430_v53, %v800_v48  ;;  %v872_v22 = vmul.f32 %v4432_v26, %v797_v57  ;;  %v5135_v47 = vld [vmem:[#allocation32_spill] sm:$0xff]  ;;  %v3437_v63 = vld [vmem:[#allocation5 + $0x220] ss:$24 sps:$4 sm:$0xff]   ;;  %v3442_v57 = vld [vmem:[#allocation5 + $0x21c] ss:$24 sps:$4 sm:$0xff]  }
 0x1c5   : > { %1643 = vmatprep.mubr.bf16.mxu0 %v4648_v1  ;;  %v948_v31 = vadd.f32 %v4435_v16, %v873_v37  ;;  %v770_v40 = vmul.f32 %v4593_v33, %v4308_v41  ;;  %v772_v3 = vmul.f32 %v4599_v54, %v4314_v43  ;;  %v769_v55 = vmul.f32 %v4593_v33, %v4305_v46 }
 0x1c6   : > { %v4665_v35 = vpop.eup %3521  ;;  %v4667_v34 = vpack.c.bf16 %v917_v27, %v915_v45  ;;  %v874_v8 = vmul.f32 %v4432_v26, %v799_v25  ;;  %1783 = vmatpush1.bf16.msra.mxu1 %v3428_v5  ;;  %v950_v42 = vadd.f32 %v4435_v16, %v875_v38  ;;  %v947_v32 = vadd.f32 %v4440_v50, %v872_v22  ;;  %v5136_v25 = vld [vmem:[#allocation29_spill] sm:$0xff] }
 0x1c7   : > { %v845_v41 = vmul.f32 %v4430_v53, %v770_v40  ;;  %v771_v23 = vmul.f32 %v4599_v54, %v5133_v24  ;;  %1978 = vmatpush1.bf16.msra.mxu0 %v3431_v12  ;;  %v847_v46 = vmul.f32 %v4430_v53, %v772_v3  ;;  %v844_v33 = vmul.f32 %v4432_v26, %v769_v55  ;;  %v3440_v40 = vld [vmem:[#allocation5 + $0x218] ss:$24 sps:$4 sm:$0xff]   ;;  %v5138_v55 = vld [vmem:[#allocation11_spill] sm:$0xff] }
 0x1c8   : > { %v4679_v19 = vpop.eup %3523  ;;  %1644 = vmatmul.mubr.bf16.gmra.mrb[16].mxu0 %v4667_v34  ;;  %v949_v43 = vadd.f32 %v4440_v50, %v874_v8  ;;  %v802_v30 = vmul.f32 %v4604_v9, %v5134_v14  ;;  %v4687_v7 = vpack.c.bf16 %v950_v42, %v948_v31  ;;  %v804_v11 = vmul.f32 %v4621_v39, %v5135_v47  ;;  %v5137_v31 = vld [vmem:[#allocation31_spill] sm:$0xff]  ;;  %v3445_v42 = vld [vmem:[#allocation5 + $0x254] ss:$24 sps:$4 sm:$0xff]  }
 0x1c9   : > { %v920_v58 = vadd.f32 %v4435_v16, %v845_v41  ;;  %v846_v54 = vmul.f32 %v4432_v26, %v771_v23  ;;  %1784 = vmatprep.subr.bf16.mxu1 %v3436_v17  ;;  %v922_v5 = vadd.f32 %v4435_v16, %v847_v46  ;;  %v919_v48 = vadd.f32 %v4440_v50, %v844_v33  ;;  %v5139_v24 = vld [vmem:[#allocation13_spill] sm:$0xff]  ;;  %v3448_v14 = vld [vmem:[#allocation5 + $0x24c] ss:$24 sps:$4 sm:$0xff]  }
 0x1ca   : > { %v4693_v36 = vpack.c.bf16 %v949_v43, %v947_v32  ;;  %v877_v37 = vmul.f32 %v4430_v53, %v802_v30  ;;  %1785 = vmatpush1.bf16.msra.mxu1 %v3434_v51  ;;  %1723 = vmatprep.mubr.bf16.mxu1 %v4687_v7  ;;  %v879_v27 = vmul.f32 %v4430_v53, %v804_v11  ;;  %3529 = vrsqrt.f32 %v716_v56  ;;  %v3443_v56 = vld [vmem:[#allocation5 + $0x250] ss:$24 sps:$4 sm:$0xff]  }
 0x1cb   : > { %v4698_v12 = vpop.eup %3525  ;;  %v921_v45 = vadd.f32 %v4440_v50, %v846_v54  ;;  %v801_v38 = vmul.f32 %v4604_v9, %v5136_v25  ;;  %v803_v22 = vmul.f32 %v4621_v39, %v5137_v31  ;;  %v4710_v8 = vpack.c.bf16 %v922_v5, %v920_v58  ;;  %1979 = vmatprep.subr.bf16.mxu0 %v3439_v18  ;;  %v5140_v46 = vld [vmem:[#allocation33_spill] sm:$0xff]  ;;  %v5141_v54 = vld [vmem:[#allocation12_spill] sm:$0xff]  ;;  %v5143_v31 = vld [vmem:[#allocation15_spill] sm:$0xff] }
 0x1cc   : > { %v4707_v17 = vpop.eup %3527  ;;  %1724 = vmatmul.mubr.bf16.gmra.mrb[16].mxu1 %v4693_v36  ;;  %v952_v3 = vadd.f32 %v4435_v16, %v877_v37  ;;  %v774_v51 = vmul.f32 %v4626_v6, %v5138_v55  ;;  %v954_v9 = vadd.f32 %v4435_v16, %v879_v27  ;;  %1980 = vmatpush1.bf16.msra.mxu0 %v3437_v63  ;;  %v3446_v11 = vld [vmem:[#allocation5 + $0x248] ss:$24 sps:$4 sm:$0xff]   ;;  %v3451_v63 = vld [vmem:[#allocation5 + $0x284] ss:$24 sps:$4 sm:$0xff]  }
 0x1cd   : > { %v4715_v32 = vpack.c.bf16 %v921_v45, %v919_v48  ;;  %v876_v39 = vmul.f32 %v4432_v26, %v801_v38  ;;  %v878_v41 = vmul.f32 %v4432_v26, %v803_v22  ;;  %1653 = vmatprep.mubr.bf16.mxu0 %v4710_v8  ;;  %v776_v23 = vmul.f32 %v4641_v62, %v5139_v24  ;;  %v3449_v27 = vld [vmem:[#allocation5 + $0x280] ss:$24 sps:$4 sm:$0xff]   ;;  %v3454_v55 = vld [vmem:[#allocation5 + $0x27c] ss:$24 sps:$4 sm:$0xff]  }
 0x1ce   : > { %v849_v43 = vmul.f32 %v4430_v53, %v774_v51  ;;  %1786 = vmatprep.subr.bf16.mxu1 %v3442_v57  ;;  %v773_v33 = vmul.f32 %v4626_v6, %v5140_v46  ;;  %v4726_v30 = vpack.c.bf16 %v954_v9, %v952_v3  ;;  %v775_v47 = vmul.f32 %v4641_v62, %v5141_v54  ;;  %v5142_v62 = vld [vmem:[#allocation14_spill] sm:$0xff]  ;;  %v5145_v9 = vld [vmem:[#allocation35_spill] sm:$0xff]  ;;  %v3457_v46 = vld [vmem:[#allocation5 + $0x2b4] ss:$24 sps:$4 sm:$0xff]  }
 0x1cf   : > { %v951_v18 = vadd.f32 %v4440_v50, %v876_v39  ;;  %v953_v58 = vadd.f32 %v4440_v50, %v878_v41  ;;  %1787 = vmatpush1.bf16.msra.mxu1 %v3440_v40  ;;  %v851_v5 = vmul.f32 %v4430_v53, %v776_v23  ;;  %1981 = vmatprep.subr.bf16.mxu0 %v3445_v42  ;;  %v5144_v40 = vld [vmem:[#allocation34_spill] sm:$0xff]  ;;  %v3455_v54 = vld [vmem:[#allocation5 + $0x2b0] ss:$24 sps:$4 sm:$0xff]  }
 0x1d0   : > { %1654 = vmatmul.mubr.bf16.gmra.mrb[20].mxu0 %v4715_v32  ;;  %v924_v48 = vadd.f32 %v4435_v16, %v849_v43  ;;  %v848_v6 = vmul.f32 %v4432_v26, %v773_v33  ;;  %1733 = vmatprep.mubr.bf16.mxu1 %v4726_v30  ;;  %v850_v57 = vmul.f32 %v4432_v26, %v775_v47  ;;  %v3452_v41 = vld [vmem:[#allocation5 + $0x278] ss:$24 sps:$4 sm:$0xff]  }
 0x1d1   : > { %v4737_v37 = vpack.c.bf16 %v953_v58, %v951_v18  ;;  %1982 = vmatpush1.bf16.msra.mxu0 %v3443_v56  ;;  %v806_v45 = vmul.f32 %v4645_v10, %v5142_v62  ;;  %v926_v25 = vadd.f32 %v4435_v16, %v851_v5  ;;  %v808_v22 = vmul.f32 %v4665_v35, %v5143_v31  ;;  %v5147_v18 = vld [vmem:[#allocation18_spill] sm:$0xff]  ;;  %v5148_v62 = vld [vmem:[#allocation36_spill] sm:$0xff] }
 0x1d2   : > { %v923_v38 = vadd.f32 %v4440_v50, %v848_v6  ;;  %1788 = vmatprep.subr.bf16.mxu1 %v3448_v14  ;;  %v805_v3 = vmul.f32 %v4645_v10, %v5144_v40  ;;  %v925_v51 = vadd.f32 %v4440_v50, %v850_v57  ;;  %v807_v39 = vmul.f32 %v4665_v35, %v5145_v9  ;;  %v5146_v10 = vld [vmem:[#allocation16_spill] sm:$0xff]  ;;  %v3461_v9 = vld [vmem:[#allocation5 + $0x2e0] ss:$24 sps:$4 sm:$0xff]  }
 0x1d3   : > { %v881_v42 = vmul.f32 %v4430_v53, %v806_v45  ;;  %1789 = vmatpush1.bf16.msra.mxu1 %v3446_v11  ;;  %1983 = vmatprep.subr.bf16.mxu0 %v3451_v63  ;;  %v4753_v56 = vpack.c.bf16 %v926_v25, %v924_v48  ;;  %v883_v24 = vmul.f32 %v4430_v53, %v808_v22  ;;  %v3460_v48 = vld [vmem:[#allocation5 + $0x2ac] ss:$24 sps:$4 sm:$0xff]  }
 0x1d4   : > { %1734 = vmatmul.mubr.bf16.gmra.mrb[20].mxu1 %v4737_v37  ;;  %v880_v23 = vmul.f32 %v4432_v26, %v805_v3  ;;  %v778_v43 = vmul.f32 %v4679_v19, %v5146_v10  ;;  %v4759_v33 = vpack.c.bf16 %v925_v51, %v923_v38  ;;  %v882_v35 = vmul.f32 %v4432_v26, %v807_v39  ;;  %v3530_v47 = vpop.eup %3529  ;;  %v3458_v38 = vld [vmem:[#allocation5 + $0x2a8] ss:$24 sps:$4 sm:$0xff]   ;;  %v5151_v39 = vld [vmem:[#allocation22_spill] sm:$0xff] }
 0x1d5   : > { %v956_v14 = vadd.f32 %v4435_v16, %v881_v42  ;;  %1984 = vmatpush1.bf16.msra.mxu0 %v3449_v27  ;;  %v780_v58 = vmul.f32 %v4698_v12, %v5147_v18  ;;  %1663 = vmatprep.mubr.bf16.mxu0 %v4753_v56  ;;  %v958_v11 = vadd.f32 %v4435_v16, %v883_v24  ;;  %v5149_v27 = vld [vmem:[#allocation17_spill] sm:$0xff]  ;;  %v5150_v40 = vld [vmem:[#allocation20_spill] sm:$0xff] }
 0x1d6   : > { %v955_v63 = vadd.f32 %v4440_v50, %v880_v23  ;;  %v853_v5 = vmul.f32 %v4430_v53, %v778_v43  ;;  %1790 = vmatprep.subr.bf16.mxu1 %v3454_v55  ;;  %v957_v6 = vadd.f32 %v4440_v50, %v882_v35  ;;  %v777_v45 = vmul.f32 %v4679_v19, %v5148_v62  ;;  %v3463_v55 = vld [vmem:[#allocation5 + $0x2e4] ss:$24 sps:$4 sm:$0xff]   ;;  %v5153_v18 = vld [vmem:[#allocation21_spill] sm:$0xff] }
 0x1d7   : > { %v855_v57 = vmul.f32 %v4430_v53, %v780_v58  ;;  %v779_v25 = vmul.f32 %v4698_v12, %v5149_v27  ;;  %1791 = vmatpush1.bf16.msra.mxu1 %v3452_v41  ;;  %v4776_v31 = vpack.c.bf16 %v958_v11, %v956_v14  ;;  %1985 = vmatprep.subr.bf16.mxu0 %v3457_v46  ;;  %v5152_v23 = vld [vmem:[#allocation19_spill] sm:$0xff]  ;;  %v3466_v43 = vld [vmem:[#allocation5 + $0x2dc] ss:$24 sps:$4 sm:$0xff]  }
 0x1d8   : > { %1664 = vmatmul.mubr.bf16.gmra.mrb[24].mxu0 %v4759_v33  ;;  %v928_v22 = vadd.f32 %v4435_v16, %v853_v5  ;;  %v810_v3 = vmul.f32 %v4707_v17, %v5150_v40  ;;  %v4781_v51 = vpack.c.bf16 %v957_v6, %v955_v63  ;;  %v852_v42 = vmul.f32 %v4432_v26, %v777_v45 }
 0x1d9   : > { %v930_v19 = vadd.f32 %v4435_v16, %v855_v57  ;;  %v854_v12 = vmul.f32 %v4432_v26, %v779_v25  ;;  %1986 = vmatpush1.bf16.msra.mxu0 %v3455_v54  ;;  %1743 = vmatprep.mubr.bf16.mxu1 %v4776_v31  ;;  %v812_v41 = vmul.f32 %v3530_v47, %v5151_v39  ;;  %v3464_v54 = vld [vmem:[#allocation5 + $0x2d8] ss:$24 sps:$4 sm:$0xff]  }
 0x1da   : > { %v885_v24 = vmul.f32 %v4430_v53, %v810_v3  ;;  %1792 = vmatprep.subr.bf16.mxu1 %v3460_v48  ;;  %v809_v10 = vmul.f32 %v4707_v17, %v5152_v23  ;;  %v927_v14 = vadd.f32 %v4440_v50, %v852_v42  ;;  %v811_v58 = vmul.f32 %v3530_v47, %v5153_v18 }
 0x1db   : > { %v978_v46 = vpack.c.bf16 %v930_v19, %v928_v22  ;;  %v929_v35 = vadd.f32 %v4440_v50, %v854_v12  ;;  %1793 = vmatpush1.bf16.msra.mxu1 %v3458_v38  ;;  %v887_v11 = vmul.f32 %v4430_v53, %v812_v41  ;;  %1987 = vmatprep.subr.bf16.mxu0 %v3463_v55 }
 0x1dc   : > { %1744 = vmatmul.mubr.bf16.gmra.mrb[24].mxu1 %v4781_v51  ;;  %v884_v63 = vmul.f32 %v4432_v26, %v809_v10  ;;  %v886_v17 = vmul.f32 %v4432_v26, %v811_v58  ;;  %v960_v48 = vadd.f32 %v4435_v16, %v885_v24  ;;  %1794 = vmatprep.subr.bf16.mxu1 %v3466_v43 }
 0x1dd   : > { %1673 = vmatprep.mubr.bf16.mxu0 %v978_v46  ;;  %v977_v5 = vpack.c.bf16 %v929_v35, %v927_v14  ;;  %1988 = vmatpush1.bf16.msra.mxu0 %v3461_v9  ;;  %v962_v6 = vadd.f32 %v4435_v16, %v887_v11 }
 0x1de   : > { %v959_v47 = vadd.f32 %v4440_v50, %v884_v63  ;;  %v961_v57 = vadd.f32 %v4440_v50, %v886_v17  ;;  %v5154_v50 = vld [vmem:[#allocation24_spill] sm:$0xff] }
 0x1df   : > { %1795 = vmatpush1.bf16.msra.mxu1 %v3464_v54  ;;  %v4802_v53 = vpack.c.bf16 %v962_v6, %v960_v48 }
 0x1e0   : > { %1674 = vmatmul.mubr.bf16.gmra.mrb[28].mxu0 %v977_v5  ;;  %v4805_v62 = vpack.c.bf16 %v961_v57, %v959_v47 }
 0x1e1   : > { %1989 = vmatprep.mubr.bf16.mxu0 %v4456_v44  ;;  %1753 = vmatprep.mubr.bf16.mxu1 %v4802_v53 }
 0x1e4   : > { %1754 = vmatmul.mubr.bf16.gmra.mrb[28].mxu1 %v4805_v62 }
 0x1e5   : > { %1796 = vmatprep.mubr.bf16.mxu1 %v4456_v44 }
 0x1e8   : > { %1990 = vmatmul.mubr.bf16.vlgmr.msra.gmra.mrb[32].mxu0 %v4458_v61 }
 0x1e9   : > { %1999 = vmatprep.mubr.bf16.mxu0 %v4489_v28 }
 0x1ec   : > { %1797 = vmatmul.mubr.bf16.vlgmr.msra.gmra.mrb[32].mxu1 %v4458_v61 }
 0x1ed   : > { %1806 = vmatprep.mubr.bf16.mxu1 %v4489_v28 }
 0x1f0   : > { %2000 = vmatmul.mubr.bf16.gmra.mrb[36].mxu0 %v4499_v59 }
 0x1f1   : > { %2009 = vmatprep.mubr.bf16.mxu0 %v4534_v60 }
 0x1f4   : > { %1807 = vmatmul.mubr.bf16.gmra.mrb[36].mxu1 %v4499_v59 }
 0x1f5   : > { %1816 = vmatprep.mubr.bf16.mxu1 %v4534_v60 }
 0x1f8   : > { %2010 = vmatmul.mubr.bf16.gmra.mrb[40].mxu0 %v4551_v29 }
 0x1f9   : > { %2019 = vmatprep.mubr.bf16.mxu0 %v4595_v2 }
 0x1fc   : > { %1817 = vmatmul.mubr.bf16.gmra.mrb[40].mxu1 %v4551_v29 }
 0x1fd   : > { %1826 = vmatprep.mubr.bf16.mxu1 %v4595_v2 }
 0x200   : > { %2020 = vmatmul.mubr.bf16.gmra.mrb[44].mxu0 %v4607_v13 }
 0x201   : > { %2029 = vmatprep.mubr.bf16.mxu0 %v4648_v1 }
 0x204   : > { %1827 = vmatmul.mubr.bf16.gmra.mrb[44].mxu1 %v4607_v13 }
 0x205   : > { %1836 = vmatprep.mubr.bf16.mxu1 %v4648_v1 }
 0x208   : > { %2030 = vmatmul.mubr.bf16.gmra.mrb[48].mxu0 %v4667_v34 }
 0x209   : > { %2039 = vmatprep.mubr.bf16.mxu0 %v4710_v8 }
 0x20c   : > { %1837 = vmatmul.mubr.bf16.gmra.mrb[48].mxu1 %v4667_v34 }
 0x20d   : > { %1846 = vmatprep.mubr.bf16.mxu1 %v4710_v8 }
 0x210   : > { %2040 = vmatmul.mubr.bf16.gmra.mrb[52].mxu0 %v4715_v32 }
 0x211   : > { %2049 = vmatprep.mubr.bf16.mxu0 %v4753_v56 }
 0x214   : > { %1847 = vmatmul.mubr.bf16.gmra.mrb[52].mxu1 %v4715_v32 }
 0x215   : > { %1856 = vmatprep.mubr.bf16.mxu1 %v4753_v56 }
 0x218   : > { %2050 = vmatmul.mubr.bf16.gmra.mrb[56].mxu0 %v4759_v33 }
 0x219   : > { %2059 = vmatprep.mubr.bf16.mxu0 %v978_v46 }
 0x21c   : > { %1857 = vmatmul.mubr.bf16.gmra.mrb[56].mxu1 %v4759_v33 }
 0x21d   : > { %1866 = vmatprep.mubr.bf16.mxu1 %v978_v46 }
 0x220   : > { %2060 = vmatmul.mubr.bf16.gmra.mrb[60].mxu0 %v977_v5 }
 0x221   : > { %2069 = vmatprep.mubr.bf16.mxu0 %v4469_v15 }
 0x224   : > { %1867 = vmatmul.mubr.bf16.gmra.mrb[60].mxu1 %v977_v5 }
 0x225   : > { %1876 = vmatprep.mubr.bf16.mxu1 %v4469_v15 }
 0x228   : > { %2070 = vmatmul.mubr.bf16.gmra.mrb[64].mxu0 %v5154_v50 }
 0x229   : > { %2079 = vmatprep.mubr.bf16.mxu0 %v4510_v52 }
 0x22c   : > { %1877 = vmatmul.mubr.bf16.gmra.mrb[64].mxu1 %v5154_v50 }
 0x22d   : > { %1886 = vmatprep.mubr.bf16.mxu1 %v4510_v52 }
 0x230   : > { %2080 = vmatmul.mubr.bf16.gmra.mrb[68].mxu0 %v4522_v4 }
 0x231   : > { %2089 = vmatprep.mubr.bf16.mxu0 %v4566_v20 }
 0x234   : > { %1887 = vmatmul.mubr.bf16.gmra.mrb[68].mxu1 %v4522_v4 }
 0x235   : > { %1896 = vmatprep.mubr.bf16.mxu1 %v4566_v20 }
 0x238   : > { %2090 = vmatmul.mubr.bf16.gmra.mrb[72].mxu0 %v4579_v49 }
 0x239   : > { %2099 = vmatprep.mubr.bf16.mxu0 %v4623_v21 }
 0x23c   : > { %1897 = vmatmul.mubr.bf16.gmra.mrb[72].mxu1 %v4579_v49 }
 0x23d   : > { %1906 = vmatprep.mubr.bf16.mxu1 %v4623_v21 }
 0x240   : > { %2100 = vmatmul.mubr.bf16.gmra.mrb[76].mxu0 %v4636_v0 }
 0x241   : > { %2109 = vmatprep.mubr.bf16.mxu0 %v4687_v7 }
 0x244   : > { %1907 = vmatmul.mubr.bf16.gmra.mrb[76].mxu1 %v4636_v0 }
 0x245   : > { %1916 = vmatprep.mubr.bf16.mxu1 %v4687_v7 }
 0x248   : > { %2110 = vmatmul.mubr.bf16.gmra.mrb[80].mxu0 %v4693_v36 }
 0x249   : > { %2119 = vmatprep.mubr.bf16.mxu0 %v4726_v30 }
 0x24c   : > { %1917 = vmatmul.mubr.bf16.gmra.mrb[80].mxu1 %v4693_v36 }
 0x24d   : > { %1926 = vmatprep.mubr.bf16.mxu1 %v4726_v30 }
 0x250   : > { %2120 = vmatmul.mubr.bf16.gmra.mrb[84].mxu0 %v4737_v37 }
 0x251   : > { %2129 = vmatprep.mubr.bf16.mxu0 %v4776_v31 }
 0x254   : > { %1927 = vmatmul.mubr.bf16.gmra.mrb[84].mxu1 %v4737_v37 }
 0x255   : > { %1936 = vmatprep.mubr.bf16.mxu1 %v4776_v31 }
 0x258   : > { %2130 = vmatmul.mubr.bf16.gmra.mrb[88].mxu0 %v4781_v51 }
 0x259   : > { %2139 = vmatprep.mubr.bf16.mxu0 %v4802_v53 }
 0x25c   : > { %1937 = vmatmul.mubr.bf16.gmra.mrb[88].mxu1 %v4781_v51 }
 0x25d   : > { %1946 = vmatprep.mubr.bf16.mxu1 %v4802_v53 }
 0x260   : > { %2140 = vmatmul.mubr.bf16.gmra.mrb[92].mxu0 %v4805_v62 }
 0x264   : > { %1947 = vmatmul.mubr.bf16.gmra.mrb[92].mxu1 %v4805_v62 }
 0x26f   : > { %v1605_v26 = vpop.f32.mrb[0].mxu0 }
 0x270   : > { %v1607_v16 = vpop.f32.mrb[1].mxu0 }
 0x271   : > { %v3130_v44 = vpack.c.bf16 %v1607_v16, %v1605_v26  ;;  %v1609_v61 = vpop.f32.mrb[2].mxu0 }
 0x272   : > { %v1611_v15 = vpop.f32.mrb[3].mxu0 }
 0x273   : > { %2726 = vst [vmem:[%s4869_s10] sm:$0xff] %v3130_v44  ;;  %v3133_v28 = vpack.c.bf16 %v1611_v15, %v1609_v61 }
 0x274   : > { %v1685_v59 = vpop.f32.mrb[0].mxu1 }
 0x275   : > { %2729 = vst [vmem:[%s4869_s10 + $0x18] sm:$0xff] %v3133_v28  ;;  %v1687_v52 = vpop.f32.mrb[1].mxu1 }
 0x276   : > { %v3178_v4 = vpack.c.bf16 %v1687_v52, %v1685_v59  ;;  %v1689_v60 = vpop.f32.mrb[2].mxu1 }
 0x277   : > { %v1691_v29 = vpop.f32.mrb[3].mxu1 }
 0x278   : > { %2774 = vst [vmem:[%s4869_s10 + $0x180] sm:$0xff] %v3178_v4  ;;  %v3181_v20 = vpack.c.bf16 %v1691_v29, %v1689_v60 }
 0x27a   : > { %2777 = vst [vmem:[%s4869_s10 + $0x198] sm:$0xff] %v3181_v20  ;;  %v1615_v49 = vpop.f32.mrb[4].mxu0 }
 0x27b   : > { %v1617_v2 = vpop.f32.mrb[5].mxu0 }
 0x27c   : > { %v3136_v13 = vpack.c.bf16 %v1617_v2, %v1615_v49  ;;  %v1619_v21 = vpop.f32.mrb[6].mxu0 }
 0x27d   : > { %v1621_v0 = vpop.f32.mrb[7].mxu0 }
 0x27e   : > { %2732 = vst [vmem:[%s4869_s10 + $0x30] sm:$0xff] %v3136_v13  ;;  %v3139_v1 = vpack.c.bf16 %v1621_v0, %v1619_v21 }
 0x27f   : > { %v1695_v34 = vpop.f32.mrb[4].mxu1 }
 0x280   : > { %2735 = vst [vmem:[%s4869_s10 + $0x48] sm:$0xff] %v3139_v1  ;;  %v1697_v7 = vpop.f32.mrb[5].mxu1 }
 0x281   : > { %v3184_v36 = vpack.c.bf16 %v1697_v7, %v1695_v34  ;;  %v1699_v8 = vpop.f32.mrb[6].mxu1 }
 0x282   : > { %v1701_v32 = vpop.f32.mrb[7].mxu1 }
 0x283   : > { %2780 = vst [vmem:[%s4869_s10 + $0x1b0] sm:$0xff] %v3184_v36  ;;  %v3187_v30 = vpack.c.bf16 %v1701_v32, %v1699_v8 }
 0x285   : > { %2783 = vst [vmem:[%s4869_s10 + $0x1c8] sm:$0xff] %v3187_v30  ;;  %v1625_v37 = vpop.f32.mrb[8].mxu0 }
 0x286   : > { %v1627_v56 = vpop.f32.mrb[9].mxu0 }
 0x287   : > { %v3142_v33 = vpack.c.bf16 %v1627_v56, %v1625_v37  ;;  %v1629_v45 = vpop.f32.mrb[10].mxu0 }
 0x288   : > { %v1631_v27 = vpop.f32.mrb[11].mxu0 }
 0x289   : > { %2738 = vst [vmem:[%s4869_s10 + $0x60] sm:$0xff] %v3142_v33  ;;  %v3145_v25 = vpack.c.bf16 %v1631_v27, %v1629_v45 }
 0x28a   : > { %v1705_v38 = vpop.f32.mrb[8].mxu1 }
 0x28b   : > { %2741 = vst [vmem:[%s4869_s10 + $0x78] sm:$0xff] %v3145_v25  ;;  %v1707_v31 = vpop.f32.mrb[9].mxu1 }
 0x28c   : > { %v3190_v22 = vpack.c.bf16 %v1707_v31, %v1705_v38  ;;  %v1709_v40 = vpop.f32.mrb[10].mxu1 }
 0x28d   : > { %v1711_v3 = vpop.f32.mrb[11].mxu1 }
 0x28e   : > { %2786 = vst [vmem:[%s4869_s10 + $0x1e0] sm:$0xff] %v3190_v22  ;;  %v3193_v55 = vpack.c.bf16 %v1711_v3, %v1709_v40 }
 0x290   : > { %v1635_v51 = vpop.f32.mrb[12].mxu0  ;;  %2789 = vst [vmem:[%s4869_s10 + $0x1f8] sm:$0xff] %v3193_v55 }
 0x291   : > { %v1637_v19 = vpop.f32.mrb[13].mxu0 }
 0x292   : > { %v3148_v42 = vpack.c.bf16 %v1637_v19, %v1635_v51  ;;  %v1639_v12 = vpop.f32.mrb[14].mxu0 }
 0x293   : > { %v1641_v9 = vpop.f32.mrb[15].mxu0 }
 0x294   : > { %2744 = vst [vmem:[%s4869_s10 + $0x90] sm:$0xff] %v3148_v42  ;;  %v3151_v39 = vpack.c.bf16 %v1641_v9, %v1639_v12 }
 0x296   : > { %2747 = vst [vmem:[%s4869_s10 + $0xa8] sm:$0xff] %v3151_v39  ;;  %v1715_v41 = vpop.f32.mrb[12].mxu1 }
 0x297   : > { %v1717_v24 = vpop.f32.mrb[13].mxu1 }
 0x298   : > { %v3196_v23 = vpack.c.bf16 %v1717_v24, %v1715_v41  ;;  %v1719_v10 = vpop.f32.mrb[14].mxu1 }
 0x299   : > { %v1721_v43 = vpop.f32.mrb[15].mxu1 }
 0x29a   : > { %2792 = vst [vmem:[%s4869_s10 + $0x210] sm:$0xff] %v3196_v23  ;;  %v3199_v46 = vpack.c.bf16 %v1721_v43, %v1719_v10 }
 0x29b   : > { %v1645_v14 = vpop.f32.mrb[16].mxu0 }
 0x29c   : > { %2795 = vst [vmem:[%s4869_s10 + $0x228] sm:$0xff] %v3199_v46  ;;  %v1647_v35 = vpop.f32.mrb[17].mxu0 }
 0x29d   : > { %v3154_v18 = vpack.c.bf16 %v1647_v35, %v1645_v14  ;;  %v1649_v58 = vpop.f32.mrb[18].mxu0 }
 0x29e   : > { %v1651_v54 = vpop.f32.mrb[19].mxu0 }
 0x29f   : > { %2750 = vst [vmem:[%s4869_s10 + $0xc0] sm:$0xff] %v3154_v18  ;;  %v3157_v11 = vpack.c.bf16 %v1651_v54, %v1649_v58  ;;  %v1725_v63 = vpop.f32.mrb[16].mxu1 }
 0x2a0   : > { %v1727_v5 = vpop.f32.mrb[17].mxu1 }
 0x2a1   : > { %2753 = vst [vmem:[%s4869_s10 + $0xd8] sm:$0xff] %v3157_v11  ;;  %v3202_v17 = vpack.c.bf16 %v1727_v5, %v1725_v63  ;;  %v1729_v48 = vpop.f32.mrb[18].mxu1 }
 0x2a2   : > { %v1731_v6 = vpop.f32.mrb[19].mxu1 }
 0x2a3   : > { %2798 = vst [vmem:[%s4869_s10 + $0x240] sm:$0xff] %v3202_v17  ;;  %v3205_v47 = vpack.c.bf16 %v1731_v6, %v1729_v48  ;;  %v1655_v57 = vpop.f32.mrb[20].mxu0 }
 0x2a4   : > { %v1657_v53 = vpop.f32.mrb[21].mxu0 }
 0x2a5   : > { %2801 = vst [vmem:[%s4869_s10 + $0x258] sm:$0xff] %v3205_v47  ;;  %v3160_v62 = vpack.c.bf16 %v1657_v53, %v1655_v57  ;;  %v1659_v50 = vpop.f32.mrb[22].mxu0 }
 0x2a6   : > { %v1661_v26 = vpop.f32.mrb[23].mxu0 }
 0x2a7   : > { %2756 = vst [vmem:[%s4869_s10 + $0xf0] sm:$0xff] %v3160_v62  ;;  %v3163_v16 = vpack.c.bf16 %v1661_v26, %v1659_v50  ;;  %v1735_v44 = vpop.f32.mrb[20].mxu1 }
 0x2a8   : > { %v1737_v61 = vpop.f32.mrb[21].mxu1 }
 0x2a9   : > { %2759 = vst [vmem:[%s4869_s10 + $0x108] sm:$0xff] %v3163_v16  ;;  %v3208_v15 = vpack.c.bf16 %v1737_v61, %v1735_v44  ;;  %v1739_v28 = vpop.f32.mrb[22].mxu1 }
 0x2aa   : > { %v1741_v59 = vpop.f32.mrb[23].mxu1 }
 0x2ab   : > { %2804 = vst [vmem:[%s4869_s10 + $0x270] sm:$0xff] %v3208_v15  ;;  %v3211_v52 = vpack.c.bf16 %v1741_v59, %v1739_v28  ;;  %v1665_v4 = vpop.f32.mrb[24].mxu0 }
 0x2ac   : > { %v1667_v60 = vpop.f32.mrb[25].mxu0 }
 0x2ad   : > { %2807 = vst [vmem:[%s4869_s10 + $0x288] sm:$0xff] %v3211_v52  ;;  %v3166_v29 = vpack.c.bf16 %v1667_v60, %v1665_v4  ;;  %v1669_v20 = vpop.f32.mrb[26].mxu0 }
 0x2ae   : > { %v1671_v49 = vpop.f32.mrb[27].mxu0 }
 0x2af   : > { %2762 = vst [vmem:[%s4869_s10 + $0x120] sm:$0xff] %v3166_v29  ;;  %v3169_v2 = vpack.c.bf16 %v1671_v49, %v1669_v20  ;;  %v1745_v13 = vpop.f32.mrb[24].mxu1 }
 0x2b0   : > { %v1747_v21 = vpop.f32.mrb[25].mxu1 }
 0x2b1   : > { %2765 = vst [vmem:[%s4869_s10 + $0x138] sm:$0xff] %v3169_v2  ;;  %v3214_v0 = vpack.c.bf16 %v1747_v21, %v1745_v13  ;;  %v1749_v1 = vpop.f32.mrb[26].mxu1 }
 0x2b2   : > { %v1751_v34 = vpop.f32.mrb[27].mxu1 }
 0x2b3   : > { %2810 = vst [vmem:[%s4869_s10 + $0x2a0] sm:$0xff] %v3214_v0  ;;  %v3217_v7 = vpack.c.bf16 %v1751_v34, %v1749_v1  ;;  %v1675_v36 = vpop.f32.mrb[28].mxu0 }
 0x2b4   : > { %v1677_v8 = vpop.f32.mrb[29].mxu0 }
 0x2b5   : > { %2813 = vst [vmem:[%s4869_s10 + $0x2b8] sm:$0xff] %v3217_v7  ;;  %v3172_v32 = vpack.c.bf16 %v1677_v8, %v1675_v36  ;;  %v1679_v30 = vpop.f32.mrb[30].mxu0 }
 0x2b6   : > { %v1681_v37 = vpop.f32.mrb[31].mxu0 }
 0x2b7   : > { %2768 = vst [vmem:[%s4869_s10 + $0x150] sm:$0xff] %v3172_v32  ;;  %v3175_v56 = vpack.c.bf16 %v1681_v37, %v1679_v30  ;;  %v1755_v33 = vpop.f32.mrb[28].mxu1 }
 0x2b8   : > { %v1757_v45 = vpop.f32.mrb[29].mxu1 }
 0x2b9   : > { %2771 = vst [vmem:[%s4869_s10 + $0x168] sm:$0xff] %v3175_v56  ;;  %v3220_v27 = vpack.c.bf16 %v1757_v45, %v1755_v33  ;;  %v1759_v25 = vpop.f32.mrb[30].mxu1 }
 0x2ba   : > { %v1761_v38 = vpop.f32.mrb[31].mxu1 }
 0x2bb   : > { %2816 = vst [vmem:[%s4869_s10 + $0x2d0] sm:$0xff] %v3220_v27  ;;  %v3223_v31 = vpack.c.bf16 %v1761_v38, %v1759_v25  ;;  %v1991_v22 = vpop.f32.mrb[32].mxu0 }
 0x2bc   : > { %v1993_v40 = vpop.f32.mrb[33].mxu0 }
 0x2bd   : > { %2819 = vst [vmem:[%s4869_s10 + $0x2e8] sm:$0xff] %v3223_v31  ;;  %v3132_v3 = vpack.c.bf16 %v1993_v40, %v1991_v22  ;;  %v1995_v55 = vpop.f32.mrb[34].mxu0 }
 0x2be   : > { %v1997_v51 = vpop.f32.mrb[35].mxu0 }
 0x2bf   : > { %2728 = vst [vmem:[%s4869_s10 + $0x10] sm:$0xff] %v3132_v3  ;;  %v3135_v19 = vpack.c.bf16 %v1997_v51, %v1995_v55  ;;  %v1798_v42 = vpop.f32.mrb[32].mxu1 }
 0x2c0   : > { %v1800_v12 = vpop.f32.mrb[33].mxu1 }
 0x2c1   : > { %2731 = vst [vmem:[%s4869_s10 + $0x28] sm:$0xff] %v3135_v19  ;;  %v3131_v9 = vpack.c.bf16 %v1800_v12, %v1798_v42  ;;  %v1802_v39 = vpop.f32.mrb[34].mxu1 }
 0x2c2   : > { %v1804_v41 = vpop.f32.mrb[35].mxu1 }
 0x2c3   : > { %2727 = vst [vmem:[%s4869_s10 + $0x8] sm:$0xff] %v3131_v9  ;;  %v3134_v24 = vpack.c.bf16 %v1804_v41, %v1802_v39  ;;  %v2001_v23 = vpop.f32.mrb[36].mxu0 }
 0x2c4   : > { %v2003_v10 = vpop.f32.mrb[37].mxu0 }
 0x2c5   : > { %2730 = vst [vmem:[%s4869_s10 + $0x20] sm:$0xff] %v3134_v24  ;;  %v3138_v43 = vpack.c.bf16 %v2003_v10, %v2001_v23  ;;  %v2005_v46 = vpop.f32.mrb[38].mxu0 }
 0x2c6   : > { %v2007_v14 = vpop.f32.mrb[39].mxu0 }
 0x2c7   : > { %2734 = vst [vmem:[%s4869_s10 + $0x40] sm:$0xff] %v3138_v43  ;;  %v3141_v35 = vpack.c.bf16 %v2007_v14, %v2005_v46  ;;  %v1808_v18 = vpop.f32.mrb[36].mxu1 }
 0x2c8   : > { %v1810_v58 = vpop.f32.mrb[37].mxu1 }
 0x2c9   : > { %2737 = vst [vmem:[%s4869_s10 + $0x58] sm:$0xff] %v3141_v35  ;;  %v3137_v54 = vpack.c.bf16 %v1810_v58, %v1808_v18  ;;  %v1812_v11 = vpop.f32.mrb[38].mxu1 }
 0x2ca   : > { %v1814_v63 = vpop.f32.mrb[39].mxu1 }
 0x2cb   : > { %2733 = vst [vmem:[%s4869_s10 + $0x38] sm:$0xff] %v3137_v54  ;;  %v3140_v5 = vpack.c.bf16 %v1814_v63, %v1812_v11  ;;  %v2011_v17 = vpop.f32.mrb[40].mxu0 }
 0x2cc   : > { %v2013_v48 = vpop.f32.mrb[41].mxu0 }
 0x2cd   : > { %2736 = vst [vmem:[%s4869_s10 + $0x50] sm:$0xff] %v3140_v5  ;;  %v3144_v6 = vpack.c.bf16 %v2013_v48, %v2011_v17  ;;  %v2015_v47 = vpop.f32.mrb[42].mxu0 }
 0x2ce   : > { %v2017_v57 = vpop.f32.mrb[43].mxu0 }
 0x2cf   : > { %2740 = vst [vmem:[%s4869_s10 + $0x70] sm:$0xff] %v3144_v6  ;;  %v3147_v53 = vpack.c.bf16 %v2017_v57, %v2015_v47  ;;  %v1818_v62 = vpop.f32.mrb[40].mxu1 }
 0x2d0   : > { %v1820_v50 = vpop.f32.mrb[41].mxu1 }
 0x2d1   : > { %2743 = vst [vmem:[%s4869_s10 + $0x88] sm:$0xff] %v3147_v53  ;;  %v3143_v26 = vpack.c.bf16 %v1820_v50, %v1818_v62  ;;  %v1822_v16 = vpop.f32.mrb[42].mxu1 }
 0x2d2   : > { %v1824_v44 = vpop.f32.mrb[43].mxu1 }
 0x2d3   : > { %2739 = vst [vmem:[%s4869_s10 + $0x68] sm:$0xff] %v3143_v26  ;;  %v3146_v61 = vpack.c.bf16 %v1824_v44, %v1822_v16  ;;  %v2021_v15 = vpop.f32.mrb[44].mxu0 }
 0x2d4   : > { %v2023_v28 = vpop.f32.mrb[45].mxu0 }
 0x2d5   : > { %2742 = vst [vmem:[%s4869_s10 + $0x80] sm:$0xff] %v3146_v61  ;;  %v3150_v59 = vpack.c.bf16 %v2023_v28, %v2021_v15  ;;  %v2025_v52 = vpop.f32.mrb[46].mxu0 }
 0x2d6   : > { %v2027_v4 = vpop.f32.mrb[47].mxu0 }
 0x2d7   : > { %2746 = vst [vmem:[%s4869_s10 + $0xa0] sm:$0xff] %v3150_v59  ;;  %v3153_v60 = vpack.c.bf16 %v2027_v4, %v2025_v52  ;;  %v1828_v29 = vpop.f32.mrb[44].mxu1 }
 0x2d8   : > { %v1830_v20 = vpop.f32.mrb[45].mxu1 }
 0x2d9   : > { %2749 = vst [vmem:[%s4869_s10 + $0xb8] sm:$0xff] %v3153_v60  ;;  %v3149_v49 = vpack.c.bf16 %v1830_v20, %v1828_v29  ;;  %v1832_v2 = vpop.f32.mrb[46].mxu1 }
 0x2da   : > { %v1834_v13 = vpop.f32.mrb[47].mxu1 }
 0x2db   : > { %2745 = vst [vmem:[%s4869_s10 + $0x98] sm:$0xff] %v3149_v49  ;;  %v3152_v21 = vpack.c.bf16 %v1834_v13, %v1832_v2  ;;  %v2031_v0 = vpop.f32.mrb[48].mxu0 }
 0x2dc   : > { %v2033_v1 = vpop.f32.mrb[49].mxu0 }
 0x2dd   : > { %2748 = vst [vmem:[%s4869_s10 + $0xb0] sm:$0xff] %v3152_v21  ;;  %v3156_v34 = vpack.c.bf16 %v2033_v1, %v2031_v0  ;;  %v2035_v7 = vpop.f32.mrb[50].mxu0 }
 0x2de   : > { %v2037_v36 = vpop.f32.mrb[51].mxu0 }
 0x2df   : > { %2752 = vst [vmem:[%s4869_s10 + $0xd0] sm:$0xff] %v3156_v34  ;;  %v3159_v8 = vpack.c.bf16 %v2037_v36, %v2035_v7  ;;  %v1838_v32 = vpop.f32.mrb[48].mxu1 }
 0x2e0   : > { %v1840_v30 = vpop.f32.mrb[49].mxu1 }
 0x2e1   : > { %2755 = vst [vmem:[%s4869_s10 + $0xe8] sm:$0xff] %v3159_v8  ;;  %v3155_v37 = vpack.c.bf16 %v1840_v30, %v1838_v32  ;;  %v1842_v56 = vpop.f32.mrb[50].mxu1 }
 0x2e2   : > { %v1844_v33 = vpop.f32.mrb[51].mxu1 }
 0x2e3   : > { %2751 = vst [vmem:[%s4869_s10 + $0xc8] sm:$0xff] %v3155_v37  ;;  %v3158_v45 = vpack.c.bf16 %v1844_v33, %v1842_v56  ;;  %v2041_v27 = vpop.f32.mrb[52].mxu0 }
 0x2e4   : > { %v2043_v25 = vpop.f32.mrb[53].mxu0 }
 0x2e5   : > { %2754 = vst [vmem:[%s4869_s10 + $0xe0] sm:$0xff] %v3158_v45  ;;  %v3162_v38 = vpack.c.bf16 %v2043_v25, %v2041_v27  ;;  %v2045_v31 = vpop.f32.mrb[54].mxu0 }
 0x2e6   : > { %v2047_v22 = vpop.f32.mrb[55].mxu0 }
 0x2e7   : > { %2758 = vst [vmem:[%s4869_s10 + $0x100] sm:$0xff] %v3162_v38  ;;  %v3165_v40 = vpack.c.bf16 %v2047_v22, %v2045_v31  ;;  %v1848_v3 = vpop.f32.mrb[52].mxu1 }
 0x2e8   : > { %v1850_v55 = vpop.f32.mrb[53].mxu1 }
 0x2e9   : > { %2761 = vst [vmem:[%s4869_s10 + $0x118] sm:$0xff] %v3165_v40  ;;  %v3161_v51 = vpack.c.bf16 %v1850_v55, %v1848_v3  ;;  %v1852_v19 = vpop.f32.mrb[54].mxu1 }
 0x2ea   : > { %v1854_v42 = vpop.f32.mrb[55].mxu1 }
 0x2eb   : > { %2757 = vst [vmem:[%s4869_s10 + $0xf8] sm:$0xff] %v3161_v51  ;;  %v3164_v12 = vpack.c.bf16 %v1854_v42, %v1852_v19  ;;  %v2051_v9 = vpop.f32.mrb[56].mxu0 }
 0x2ec   : > { %v2053_v39 = vpop.f32.mrb[57].mxu0 }
 0x2ed   : > { %2760 = vst [vmem:[%s4869_s10 + $0x110] sm:$0xff] %v3164_v12  ;;  %v3168_v41 = vpack.c.bf16 %v2053_v39, %v2051_v9  ;;  %v2055_v24 = vpop.f32.mrb[58].mxu0 }
 0x2ee   : > { %v2057_v23 = vpop.f32.mrb[59].mxu0 }
 0x2ef   : > { %2764 = vst [vmem:[%s4869_s10 + $0x130] sm:$0xff] %v3168_v41  ;;  %v3171_v10 = vpack.c.bf16 %v2057_v23, %v2055_v24  ;;  %v1858_v43 = vpop.f32.mrb[56].mxu1 }
 0x2f0   : > { %v1860_v46 = vpop.f32.mrb[57].mxu1 }
 0x2f1   : > { %2767 = vst [vmem:[%s4869_s10 + $0x148] sm:$0xff] %v3171_v10  ;;  %v3167_v14 = vpack.c.bf16 %v1860_v46, %v1858_v43  ;;  %v1862_v35 = vpop.f32.mrb[58].mxu1 }
 0x2f2   : > { %v1864_v18 = vpop.f32.mrb[59].mxu1 }
 0x2f3   : > { %2763 = vst [vmem:[%s4869_s10 + $0x128] sm:$0xff] %v3167_v14  ;;  %v3170_v58 = vpack.c.bf16 %v1864_v18, %v1862_v35  ;;  %v2061_v54 = vpop.f32.mrb[60].mxu0 }
 0x2f4   : > { %v2063_v11 = vpop.f32.mrb[61].mxu0 }
 0x2f5   : > { %2766 = vst [vmem:[%s4869_s10 + $0x140] sm:$0xff] %v3170_v58  ;;  %v3174_v63 = vpack.c.bf16 %v2063_v11, %v2061_v54  ;;  %v2065_v5 = vpop.f32.mrb[62].mxu0 }
 0x2f6   : > { %v2067_v17 = vpop.f32.mrb[63].mxu0 }
 0x2f7   : > { %2770 = vst [vmem:[%s4869_s10 + $0x160] sm:$0xff] %v3174_v63  ;;  %v3177_v48 = vpack.c.bf16 %v2067_v17, %v2065_v5  ;;  %v1868_v6 = vpop.f32.mrb[60].mxu1 }
 0x2f8   : > { %v1870_v47 = vpop.f32.mrb[61].mxu1 }
 0x2f9   : > { %2773 = vst [vmem:[%s4869_s10 + $0x178] sm:$0xff] %v3177_v48  ;;  %v3173_v57 = vpack.c.bf16 %v1870_v47, %v1868_v6  ;;  %v1872_v53 = vpop.f32.mrb[62].mxu1 }
 0x2fa   : > { %v1874_v62 = vpop.f32.mrb[63].mxu1 }
 0x2fb   : > { %2769 = vst [vmem:[%s4869_s10 + $0x158] sm:$0xff] %v3173_v57  ;;  %v3176_v50 = vpack.c.bf16 %v1874_v62, %v1872_v53  ;;  %v2071_v26 = vpop.f32.mrb[64].mxu0 }
 0x2fc   : > { %v2073_v16 = vpop.f32.mrb[65].mxu0 }
 0x2fd   : > { %2772 = vst [vmem:[%s4869_s10 + $0x170] sm:$0xff] %v3176_v50  ;;  %v3180_v44 = vpack.c.bf16 %v2073_v16, %v2071_v26  ;;  %v2075_v61 = vpop.f32.mrb[66].mxu0 }
 0x2fe   : > { %v2077_v15 = vpop.f32.mrb[67].mxu0 }
 0x2ff   : > { %2776 = vst [vmem:[%s4869_s10 + $0x190] sm:$0xff] %v3180_v44  ;;  %v3183_v28 = vpack.c.bf16 %v2077_v15, %v2075_v61  ;;  %v1878_v59 = vpop.f32.mrb[64].mxu1 }
 0x300   : > { %v1880_v52 = vpop.f32.mrb[65].mxu1 }
 0x301   : > { %2779 = vst [vmem:[%s4869_s10 + $0x1a8] sm:$0xff] %v3183_v28  ;;  %v3179_v4 = vpack.c.bf16 %v1880_v52, %v1878_v59  ;;  %v1882_v60 = vpop.f32.mrb[66].mxu1 }
 0x302   : > { %v1884_v29 = vpop.f32.mrb[67].mxu1 }
 0x303   : > { %2775 = vst [vmem:[%s4869_s10 + $0x188] sm:$0xff] %v3179_v4  ;;  %v3182_v20 = vpack.c.bf16 %v1884_v29, %v1882_v60  ;;  %v2081_v49 = vpop.f32.mrb[68].mxu0 }
 0x304   : > { %v2083_v2 = vpop.f32.mrb[69].mxu0 }
 0x305   : > { %2778 = vst [vmem:[%s4869_s10 + $0x1a0] sm:$0xff] %v3182_v20  ;;  %v3186_v13 = vpack.c.bf16 %v2083_v2, %v2081_v49  ;;  %v2085_v21 = vpop.f32.mrb[70].mxu0 }
 0x306   : > { %v2087_v0 = vpop.f32.mrb[71].mxu0 }
 0x307   : > { %2782 = vst [vmem:[%s4869_s10 + $0x1c0] sm:$0xff] %v3186_v13  ;;  %v3189_v1 = vpack.c.bf16 %v2087_v0, %v2085_v21  ;;  %v1888_v34 = vpop.f32.mrb[68].mxu1 }
 0x308   : > { %v1890_v7 = vpop.f32.mrb[69].mxu1 }
 0x309   : > { %2785 = vst [vmem:[%s4869_s10 + $0x1d8] sm:$0xff] %v3189_v1  ;;  %v3185_v36 = vpack.c.bf16 %v1890_v7, %v1888_v34  ;;  %v1892_v8 = vpop.f32.mrb[70].mxu1 }
 0x30a   : > { %v1894_v32 = vpop.f32.mrb[71].mxu1 }
 0x30b   : > { %2781 = vst [vmem:[%s4869_s10 + $0x1b8] sm:$0xff] %v3185_v36  ;;  %v3188_v30 = vpack.c.bf16 %v1894_v32, %v1892_v8  ;;  %v2091_v37 = vpop.f32.mrb[72].mxu0 }
 0x30c   : > { %v2093_v56 = vpop.f32.mrb[73].mxu0 }
 0x30d   : > { %2784 = vst [vmem:[%s4869_s10 + $0x1d0] sm:$0xff] %v3188_v30  ;;  %v3192_v33 = vpack.c.bf16 %v2093_v56, %v2091_v37  ;;  %v2095_v45 = vpop.f32.mrb[74].mxu0 }
 0x30e   : > { %v2097_v27 = vpop.f32.mrb[75].mxu0 }
 0x30f   : > { %2788 = vst [vmem:[%s4869_s10 + $0x1f0] sm:$0xff] %v3192_v33  ;;  %v3195_v25 = vpack.c.bf16 %v2097_v27, %v2095_v45  ;;  %v1898_v38 = vpop.f32.mrb[72].mxu1 }
 0x310   : > { %v1900_v31 = vpop.f32.mrb[73].mxu1 }
 0x311   : > { %2791 = vst [vmem:[%s4869_s10 + $0x208] sm:$0xff] %v3195_v25  ;;  %v3191_v22 = vpack.c.bf16 %v1900_v31, %v1898_v38  ;;  %v1902_v40 = vpop.f32.mrb[74].mxu1 }
 0x312   : > { %v1904_v3 = vpop.f32.mrb[75].mxu1 }
 0x313   : > { %2787 = vst [vmem:[%s4869_s10 + $0x1e8] sm:$0xff] %v3191_v22  ;;  %v3194_v55 = vpack.c.bf16 %v1904_v3, %v1902_v40  ;;  %v2101_v51 = vpop.f32.mrb[76].mxu0 }
 0x314   : > { %v2103_v19 = vpop.f32.mrb[77].mxu0 }
 0x315   : > { %2790 = vst [vmem:[%s4869_s10 + $0x200] sm:$0xff] %v3194_v55  ;;  %v3198_v42 = vpack.c.bf16 %v2103_v19, %v2101_v51  ;;  %v2105_v12 = vpop.f32.mrb[78].mxu0 }
 0x316   : > { %v2107_v9 = vpop.f32.mrb[79].mxu0 }
 0x317   : > { %2794 = vst [vmem:[%s4869_s10 + $0x220] sm:$0xff] %v3198_v42  ;;  %v3201_v39 = vpack.c.bf16 %v2107_v9, %v2105_v12  ;;  %v1908_v41 = vpop.f32.mrb[76].mxu1 }
 0x318   : > { %v1910_v24 = vpop.f32.mrb[77].mxu1 }
 0x319   : > { %2797 = vst [vmem:[%s4869_s10 + $0x238] sm:$0xff] %v3201_v39  ;;  %v3197_v23 = vpack.c.bf16 %v1910_v24, %v1908_v41  ;;  %v1912_v10 = vpop.f32.mrb[78].mxu1 }
 0x31a   : > { %v1914_v43 = vpop.f32.mrb[79].mxu1 }
 0x31b   : > { %2793 = vst [vmem:[%s4869_s10 + $0x218] sm:$0xff] %v3197_v23  ;;  %v3200_v46 = vpack.c.bf16 %v1914_v43, %v1912_v10  ;;  %v2111_v14 = vpop.f32.mrb[80].mxu0 }
 0x31c   : > { %v2113_v35 = vpop.f32.mrb[81].mxu0 }
 0x31d   : > { %2796 = vst [vmem:[%s4869_s10 + $0x230] sm:$0xff] %v3200_v46  ;;  %v3204_v18 = vpack.c.bf16 %v2113_v35, %v2111_v14  ;;  %v2115_v58 = vpop.f32.mrb[82].mxu0 }
 0x31e   : > { %v2117_v54 = vpop.f32.mrb[83].mxu0 }
 0x31f   : > { %2800 = vst [vmem:[%s4869_s10 + $0x250] sm:$0xff] %v3204_v18  ;;  %v3207_v11 = vpack.c.bf16 %v2117_v54, %v2115_v58  ;;  %v1918_v63 = vpop.f32.mrb[80].mxu1 }
 0x320   : > { %v1920_v5 = vpop.f32.mrb[81].mxu1 }
 0x321   : > { %2803 = vst [vmem:[%s4869_s10 + $0x268] sm:$0xff] %v3207_v11  ;;  %v3203_v17 = vpack.c.bf16 %v1920_v5, %v1918_v63  ;;  %v1922_v48 = vpop.f32.mrb[82].mxu1 }
 0x322   : > { %v1924_v6 = vpop.f32.mrb[83].mxu1 }
 0x323   : > { %2799 = vst [vmem:[%s4869_s10 + $0x248] sm:$0xff] %v3203_v17  ;;  %v3206_v47 = vpack.c.bf16 %v1924_v6, %v1922_v48  ;;  %v2121_v57 = vpop.f32.mrb[84].mxu0 }
 0x324   : > { %v2123_v53 = vpop.f32.mrb[85].mxu0 }
 0x325   : > { %2802 = vst [vmem:[%s4869_s10 + $0x260] sm:$0xff] %v3206_v47  ;;  %v3210_v62 = vpack.c.bf16 %v2123_v53, %v2121_v57  ;;  %v2125_v50 = vpop.f32.mrb[86].mxu0 }
 0x326   : > { %v2127_v26 = vpop.f32.mrb[87].mxu0 }
 0x327   : > { %2806 = vst [vmem:[%s4869_s10 + $0x280] sm:$0xff] %v3210_v62  ;;  %v3213_v16 = vpack.c.bf16 %v2127_v26, %v2125_v50  ;;  %v1928_v44 = vpop.f32.mrb[84].mxu1 }
 0x328   : > { %v1930_v61 = vpop.f32.mrb[85].mxu1 }
 0x329   : > { %2809 = vst [vmem:[%s4869_s10 + $0x298] sm:$0xff] %v3213_v16  ;;  %v3209_v15 = vpack.c.bf16 %v1930_v61, %v1928_v44  ;;  %v1932_v28 = vpop.f32.mrb[86].mxu1 }
 0x32a   : > { %v1934_v59 = vpop.f32.mrb[87].mxu1 }
 0x32b   : > { %2805 = vst [vmem:[%s4869_s10 + $0x278] sm:$0xff] %v3209_v15  ;;  %v3212_v52 = vpack.c.bf16 %v1934_v59, %v1932_v28  ;;  %v2131_v4 = vpop.f32.mrb[88].mxu0 }
 0x32c   : > { %v2133_v60 = vpop.f32.mrb[89].mxu0 }
 0x32d   : > { %2808 = vst [vmem:[%s4869_s10 + $0x290] sm:$0xff] %v3212_v52  ;;  %v3216_v29 = vpack.c.bf16 %v2133_v60, %v2131_v4  ;;  %v2135_v20 = vpop.f32.mrb[90].mxu0 }
 0x32e   : > { %v2137_v49 = vpop.f32.mrb[91].mxu0 }
 0x32f   : > { %2812 = vst [vmem:[%s4869_s10 + $0x2b0] sm:$0xff] %v3216_v29  ;;  %v3219_v2 = vpack.c.bf16 %v2137_v49, %v2135_v20  ;;  %v1938_v13 = vpop.f32.mrb[88].mxu1 }
 0x330   : > { %v1940_v21 = vpop.f32.mrb[89].mxu1 }
 0x331   : > { %2815 = vst [vmem:[%s4869_s10 + $0x2c8] sm:$0xff] %v3219_v2  ;;  %v3215_v0 = vpack.c.bf16 %v1940_v21, %v1938_v13  ;;  %v1942_v1 = vpop.f32.mrb[90].mxu1 }
 0x332   : > { %v1944_v34 = vpop.f32.mrb[91].mxu1 }
 0x333   : > { %2811 = vst [vmem:[%s4869_s10 + $0x2a8] sm:$0xff] %v3215_v0  ;;  %v3218_v7 = vpack.c.bf16 %v1944_v34, %v1942_v1  ;;  %v2141_v36 = vpop.f32.mrb[92].mxu0 }
 0x334   : > { %v2143_v8 = vpop.f32.mrb[93].mxu0 }
 0x335   : > { %2814 = vst [vmem:[%s4869_s10 + $0x2c0] sm:$0xff] %v3218_v7  ;;  %v3222_v32 = vpack.c.bf16 %v2143_v8, %v2141_v36  ;;  %v2145_v30 = vpop.f32.mrb[94].mxu0 }
 0x336   : > { %v2147_v37 = vpop.f32.mrb[95].mxu0 }
 0x337   : > { %2818 = vst [vmem:[%s4869_s10 + $0x2e0] sm:$0xff] %v3222_v32  ;;  %v3225_v56 = vpack.c.bf16 %v2147_v37, %v2145_v30  ;;  %v1948_v33 = vpop.f32.mrb[92].mxu1 }
 0x338   : > { %v1950_v45 = vpop.f32.mrb[93].mxu1 }
 0x339   : > { %2821 = vst [vmem:[%s4869_s10 + $0x2f8] sm:$0xff] %v3225_v56  ;;  %v3221_v27 = vpack.c.bf16 %v1950_v45, %v1948_v33  ;;  %v1952_v25 = vpop.f32.mrb[94].mxu1 }
 0x33a   : > { %v1954_v38 = vpop.f32.mrb[95].mxu1 }
 0x33b   : > { %2817 = vst [vmem:[%s4869_s10 + $0x2d8] sm:$0xff] %v3221_v27  ;;  %v3224_v31 = vpack.c.bf16 %v1954_v38, %v1952_v25 }
 0x33d   : > { %2820 = vst [vmem:[%s4869_s10 + $0x2f0] sm:$0xff] %v3224_v31 }
 0x33e   : > { %3602 = shalt.err (!%p3599_p7)
}
 0x33f   : > { %s3603_s20 = scalar_lea.hbm %s4970_s8, 12288  ;;  %s3607_s9 = scalar_lea.hbm %s5022_s4, 24576 }
 0x340   : > { %p3604_p9 = scmp.ne.s32.totalorder %s4970_s8, %s3603_s20  ;;  %p3608_p5 = scmp.lt.u32.totalorder %s4970_s8, %s5022_s4 }
 0x341   : > { %p3609_p11 = scmp.lt.u32.totalorder %s3607_s9, %s3603_s20  ;;  %p3611_p4 = scmp.lt.u32.totalorder %s3603_s20, %s4970_s8 }
 0x342   : > { %p3605_p2 = pnand %p3604_p9, %p3786_p12 }
 0x343   : > { %p3610_p1 = por %p3609_p11, %p3608_p5 }
 0x344   : > { %p3606_p0 = pneg %p3605_p2 }
 0x345   : > { %p3612_p6 = por %p3611_p4, %p3610_p1 }
 0x347   : > { %p3613_p8 = pnand %p3612_p6, %p3606_p0 }
 0x349   : > { %3616 = shalt.err (!%p3613_p8)
}
 0x34a   : > { %s3668_s10 = smov 384   ;;  %s3669_s6 = smov 24  }
 0x34b   : > { %3266 = dma.vmem_to_hbm [thread:$0]  (%p3786_p12), %s4973_s5, 12288, %s4970_s8, %s2823_s19, %s3668_s10, %s3668_s10, %s3669_s6  }
 0x34c PF: > { %s2852_s7 = sand.u32 1, %s3647_s15   ;;  %p5155_p10 = scmp.ne.s32.totalorder %s5067_s22, 0 }
 0x34d   : > { %p5156_p13 = scmp.ge.s32.totalorder %s3659_s18, 2  ;;  %s2853_s26 = scalar_lea.sflag [#allocation4], %s2852_s7 }
 0x34f   : > { %p3277_p3 = pnand %p5156_p13, %p5155_p10 }
 0x351   : > { %3642 = dma.done.wait (!%p3277_p3), %s2853_s26, 12288  }
 0x352   : > { %3644 = vsyncadd (!%p3277_p3), %s2853_s26, 4294955008  ;;  %p18_p7 = scmp.ge.s32.totalorder %s3751_s27, 4   ;;  %s5157_s15 = smov %s3651_s16 }
 0x353   : > { %s5158_s16 = smov %s3655_s17  ;;  %s5159_s17 = smov %s3782_s24 }
 0x354   : > { %s5160_s18 = smov %s3751_s27  ;;  %20 = sbr.rel (!%p18_p7) target bundleno = 6 (0x6), region = 85 }
 0x35b   :  { %2858 = vsyncpa [#allocation3], 1 }
 0x35c   :  { %2860 = vsyncpa [#allocation3 + $0x1], 1 }
 0x35d   :  { %2861 = vsyncpa [#allocation6], 1 }
 0x35e   :  { %2862 = vsyncpa [#allocation4], 1 }
 0x35f   :  { %2864 = vsyncpa [#allocation4 + $0x1], 1 }

</bundles_post_ra>
